<compile_context>
chip_gen: v7x
topology: tpu7x:2x2x1
jax: 0.10.0
libtpu: 0.0.40
codegen_flags: <defaults>
</compile_context>

<pallas_src>
import functools

import jax
import jax.numpy as jnp
from jax.experimental import pallas as pl
from jax.experimental.pallas import tpu as pltpu


# ------------------------------ Pallas kernel -------------------------------

def _skip_fusion_kernel(xy_ref, mask_ref, w3_ref, w1_ref, b_ref, o_ref, *,
                        C, W):
    # xy_ref:   (2C, L)      stacked streams [x ; y], lane-dense spatial axis
    # mask_ref: (9, L)       f32 boundary masks (1.0 inside the image)
    # w3_ref:   (3, 2C, 18C) stacked (block-diag) scale-folded 3x3 weights
    # w1_ref:   (3, 2C, 2C)  stacked 1x1 weights (M1, M2, con1-padded)
    # b_ref:    (5, 2C, 1)   folded BN biases
    # o_ref:    (C, L)       output = x + res
    z0 = xy_ref[...]                         # (2C, L) : [x ; y]
    masks = mask_ref[...]                    # (9, L)  f32
    L = z0.shape[-1]

    def conv3x3(z, idx):
        # im2col via lane rolls (XLU) + precomputed boundary masks (VPU),
        # then one (2C, 18C) @ (18C, L) MXU matmul for BOTH streams.
        taps = []
        for k in range(9):
            dh, dw = k // 3 - 1, k % 3 - 1
            s = dh * W + dw                  # flat spatial offset of tap k
            if s == 0:
                taps.append(z)               # center tap, always in-bounds
            else:
                t = pltpu.roll(z, shift=(-s) % L, axis=1)
                taps.append(t * masks[k:k + 1])
        im2col = jnp.concatenate(taps, axis=0)            # (18C, L), aligned
        out = jnp.dot(w3_ref[idx], im2col,
                      preferred_element_type=jnp.float32)  # (2C, L)
        return jnp.maximum(out + b_ref[idx], 0.0)

    # z1 = [img1_1a(x) ; gaze1_1a(y)]
    z1 = conv3x3(z0, 0)
    # z2 = [gi ; gg] = [img1_1b(.) ; gaze1_1b(.)]
    z2 = conv3x3(z1, 1)

    # Stacked 1x1 over the (never materialized) channel concats:
    #   gi2 = img1_2(cat[gg, x]),  gg2 = gaze1_2(cat[gi, y])
    u = (jnp.dot(w1_ref[0], z2, preferred_element_type=jnp.float32)
         + jnp.dot(w1_ref[1], z0, preferred_element_type=jnp.float32))
    u = jnp.maximum(u + b_ref[3], 0.0)       # (2C, L) = [gi2 ; gg2]

    # v = [img1_3(gi2) ; gaze1_3(gg2)]
    v = conv3x3(u, 2)

    # res = con1(cat[gi2', gg2']) ; rows >= C of the padded weight are zero.
    res = jnp.dot(w1_ref[2], v, preferred_element_type=jnp.float32)
    res = jnp.maximum(res + b_ref[4], 0.0)

    # Fused residual add; only the top C rows (img channels) are the output.
    o_ref[...] = (z0[:C] + res[:C]).astype(o_ref.dtype)


# ------------------------------ Wrapper --------------------------------------

def _default_num_blocks(n_images):
    # v7x has two TensorCores per chip: give each core one big block.
    # Single-TC chips (v5e/v6e) get the fully collapsed single-step grid.
    try:
        kind = jax.devices()[0].device_kind.lower()
    except Exception:
        kind = ""
    if ("v7" in kind or "7x" in kind) and n_images % 2 == 0:
        return 2
    return 1


def _build_tap_masks(H, W, imgs_per_block):
    # (9, imgs_per_block*H*W) f32: 1.0 where the shifted tap stays in-image.
    pos = jnp.arange(H * W)
    row = pos // W
    col = pos % W
    rows = []
    for kh in range(3):
        for kw in range(3):
            dh, dw = kh - 1, kw - 1
            ok = ((row + dh >= 0) & (row + dh < H) &
                  (col + dw >= 0) & (col + dw < W))
            rows.append(ok)
    m = jnp.stack(rows).astype(jnp.float32)        # (9, H*W)
    return jnp.tile(m, (1, imgs_per_block))        # (9, imgs_per_block*H*W)


def skip_fusion_forward(kparams, x_nchw, y_nchw, num_blocks=None):
    """x_nchw, y_nchw: (N, C, H, W) float32 (PyTorch NCHW convention)."""
    N, C, H, W = x_nchw.shape
    HW = H * W
    Ltot = N * HW
    G = _default_num_blocks(N) if num_blocks is None else num_blocks
    assert N % G == 0 and (Ltot // G) % 128 == 0
    Lb = Ltot // G

    # Lane-dense, stream-stacked layout: rows = [x-channels ; y-channels],
    # lanes = image-major flattened spatial positions.
    def to_lane(a):
        return jnp.transpose(a.reshape(N, C, HW), (1, 0, 2)).reshape(C, Ltot)

    xy = jnp.concatenate([to_lane(x_nchw), to_lane(y_nchw)], axis=0)  # (2C,Ltot)
    masks = _build_tap_masks(H, W, N // G)                            # (9, Lb)
    w3, w1, bias = kparams["w3"], kparams["w1"], kparams["bias"]

    kernel = functools.partial(_skip_fusion_kernel, C=C, W=W)
    out = pl.pallas_call(
        kernel,
        out_shape=jax.ShapeDtypeStruct((C, Ltot), x_nchw.dtype),
        grid=(G,),
        in_specs=[
            pl.BlockSpec((2 * C, Lb), lambda g: (0, g)),
            pl.BlockSpec(masks.shape, lambda g: (0, 0)),
            pl.BlockSpec(w3.shape, lambda g: (0, 0, 0)),
            pl.BlockSpec(w1.shape, lambda g: (0, 0, 0)),
            pl.BlockSpec(bias.shape, lambda g: (0, 0, 0)),
        ],
        out_specs=pl.BlockSpec((C, Lb), lambda g: (0, g)),
        compiler_params=pltpu.CompilerParams(
            dimension_semantics=("parallel",)),
    )(xy, masks, w3, w1, bias)

    out = jnp.transpose(out.reshape(C, N, HW), (1, 0, 2))
    return out.reshape(N, C, H, W)


# --------------------------- Parameter setup ---------------------------------

def _init_conv_bn(key, ksz, cin, cout, eps=1e-5):
    k1, k2, k3, k4, k5 = jax.random.split(key, 5)
    fan_in = ksz * ksz * cin
    w = jax.random.normal(k1, (ksz, ksz, cin, cout), jnp.float32) / jnp.sqrt(
        float(fan_in))
    gamma = 1.0 + 0.1 * jax.random.normal(k2, (cout,), jnp.float32)
    beta = 0.1 * jax.random.normal(k3, (cout,), jnp.float32)
    mean = 0.1 * jax.random.normal(k4, (cout,), jnp.float32)
    var = jnp.abs(1.0 + 0.1 * jax.random.normal(k5, (cout,), jnp.float32))
    scale = gamma / jnp.sqrt(var + eps)
    bias = beta - mean * scale
    return {"w": w, "s": scale, "b": bias}


_LAYERS = (
    ("img1_1a", 3, 1), ("img1_1b", 3, 1),
    ("gaze1_1a", 3, 1), ("gaze1_1b", 3, 1),
    ("img1_2", 1, 2), ("gaze1_2", 1, 2),
    ("img1_3", 3, 1), ("gaze1_3", 3, 1),
    ("con1", 1, 2),
)


def init_skip_fusion_params(key, width):
    keys = jax.random.split(key, len(_LAYERS))
    return {name: _init_conv_bn(k, ksz, mult * width, width)
            for k, (name, ksz, mult) in zip(keys, _LAYERS)}


def pack_params_for_kernel(params, width):
    """Fold BN scale, stack the img/gaze streams block-diagonally, and pack."""
    C = width

    def folded3(p):
        # HWIO (3,3,C,C) -> (Cout, 3, 3, Cin) with BN scale folded into rows.
        return jnp.transpose(p["w"], (3, 0, 1, 2)) * p["s"][:, None, None, None]

    def stacked3(name_img, name_gaze):
        wi = folded3(params[name_img])
        wg = folded3(params[name_gaze])
        w = jnp.zeros((2 * C, 3, 3, 2 * C), jnp.float32)
        w = w.at[:C, :, :, :C].set(wi)       # img stream -> top-left block
        w = w.at[C:, :, :, C:].set(wg)       # gaze stream -> bottom-right
        return w.reshape(2 * C, 9 * 2 * C)   # K order = (tap k, channel)

    w3 = jnp.stack([
        stacked3("img1_1a", "gaze1_1a"),
        stacked3("img1_1b", "gaze1_1b"),
        stacked3("img1_3", "gaze1_3"),
    ])                                                      # (3, 2C, 18C)

    def folded1(p):
        # (1,1,2C,C) HWIO -> (C, 2C) matmul matrix with BN scale folded.
        return p["w"][0, 0].T * p["s"][:, None]

    wi2 = folded1(params["img1_2"])    # gi2 = wi2[:,:C]@gg + wi2[:,C:]@x
    wg2 = folded1(params["gaze1_2"])   # gg2 = wg2[:,:C]@gi + wg2[:,C:]@y
    wc = folded1(params["con1"])       # res = wc @ [gi2' ; gg2']

    m1 = jnp.zeros((2 * C, 2 * C), jnp.float32)   # applied to z2 = [gi ; gg]
    m1 = m1.at[:C, C:].set(wi2[:, :C])
    m1 = m1.at[C:, :C].set(wg2[:, :C])
    m2 = jnp.zeros((2 * C, 2 * C), jnp.float32)   # applied to z0 = [x ; y]
    m2 = m2.at[:C, :C].set(wi2[:, C:])
    m2 = m2.at[C:, C:].set(wg2[:, C:])
    mcon = jnp.zeros((2 * C, 2 * C), jnp.float32)  # con1 padded to 2C rows
    mcon = mcon.at[:C, :].set(wc)
    w1 = jnp.stack([m1, m2, mcon])                          # (3, 2C, 2C)

    def b2(name_img, name_gaze):
        return jnp.concatenate([params[name_img]["b"], params[name_gaze]["b"]])

    bias = jnp.stack([
        b2("img1_1a", "gaze1_1a"),
        b2("img1_1b", "gaze1_1b"),
        b2("img1_3", "gaze1_3"),
        b2("img1_2", "gaze1_2"),
        jnp.concatenate([params["con1"]["b"], jnp.zeros((C,), jnp.float32)]),
    ])[:, :, None]                                          # (5, 2C, 1)

    return {"w3": w3, "w1": w1, "bias": bias}


# ---------------------------- Reference (checks) -----------------------------

def _ref_conv_bn_relu(x, p, pad):
    y = jax.lax.conv_general_dilated(
        x, p["w"], window_strides=(1, 1), padding=[(pad, pad), (pad, pad)],
        dimension_numbers=("NCHW", "HWIO", "NCHW"),
        precision=jax.lax.Precision.HIGHEST)
    return jnp.maximum(
        y * p["s"].reshape(1, -1, 1, 1) + p["b"].reshape(1, -1, 1, 1), 0.0)


def skip_fusion_reference(params, x, y):
    p = params
    gi = _ref_conv_bn_relu(x, p["img1_1a"], 1)
    gi = _ref_conv_bn_relu(gi, p["img1_1b"], 1)
    gg = _ref_conv_bn_relu(y, p["gaze1_1a"], 1)
    gg = _ref_conv_bn_relu(gg, p["gaze1_1b"], 1)
    gi2 = _ref_conv_bn_relu(jnp.concatenate([gg, x], axis=1), p["img1_2"], 0)
    gg2 = _ref_conv_bn_relu(jnp.concatenate([gi, y], axis=1), p["gaze1_2"], 0)
    gi2 = _ref_conv_bn_relu(gi2, p["img1_3"], 1)
    gg2 = _ref_conv_bn_relu(gg2, p["gaze1_3"], 1)
    res = _ref_conv_bn_relu(jnp.concatenate([gi2, gg2], axis=1), p["con1"], 0)
    return x + res


# --------------------------------- Main ---------------------------------------

if __name__ == "__main__":
    width = 4
    N, H, W = 2, 16, 16

    key = jax.random.PRNGKey(0)
    kx, ky, kp = jax.random.split(key, 3)

    # PyTorch-convention NCHW inputs.
    x = jax.random.normal(kx, (N, width, H, W), jnp.float32)
    y = jax.random.normal(ky, (N, width, H, W), jnp.float32)

    params = init_skip_fusion_params(kp, width)
    kparams = pack_params_for_kernel(params, width)

    out = jax.block_until_ready(skip_fusion_forward(kparams, x, y))
    ref = jax.block_until_ready(skip_fusion_reference(params, x, y))

    assert out.shape == (N, width, H, W)
    assert jnp.allclose(out, ref, atol=2e-3, rtol=2e-3), (
        float(jnp.max(jnp.abs(out - ref))))

    print("KERNEL_OK")
</pallas_src>

<mosaic_0001>
module attributes {stable_mosaic.version = 11 : i64} {
  func.func @_skip_fusion_kernel(%arg0: i32, %arg1: memref<8x512xf32, #tpu.memory_space<vmem>>, %arg2: memref<9x512xf32, #tpu.memory_space<vmem>>, %arg3: memref<3x8x72xf32, #tpu.memory_space<vmem>>, %arg4: memref<3x8x8xf32, #tpu.memory_space<vmem>>, %arg5: memref<5x8x1xf32, #tpu.memory_space<vmem>>, %arg6: memref<4x512xf32, #tpu.memory_space<vmem>>) attributes {dimension_semantics = [#tpu.dimension_semantics<parallel>], iteration_bounds = array<i64: 1>, scalar_prefetch = 0 : i64, scratch_operands = 0 : i64, tpu.core_type = #tpu.core_type<tc>, window_params = [{transform_indices = @transform_0, window_bounds = array<i64: 8, 512>}, {pipeline_mode = #tpu.pipeline_mode<synchronous>, transform_indices = @transform_1, window_bounds = array<i64: 9, 512>}, {pipeline_mode = #tpu.pipeline_mode<synchronous>, transform_indices = @transform_2, window_bounds = array<i64: 3, 8, 72>}, {pipeline_mode = #tpu.pipeline_mode<synchronous>, transform_indices = @transform_3, window_bounds = array<i64: 3, 8, 8>}, {pipeline_mode = #tpu.pipeline_mode<synchronous>, transform_indices = @transform_4, window_bounds = array<i64: 5, 8, 1>}, {transform_indices = @transform_5, window_bounds = array<i64: 4, 512>}]} {
    %c0 = arith.constant 0 : index
    %c0_0 = arith.constant 0 : index
    %0 = vector.load %arg1[%c0, %c0_0] : memref<8x512xf32, #tpu.memory_space<vmem>>, vector<8x512xf32>
    %c0_1 = arith.constant 0 : index
    %c0_2 = arith.constant 0 : index
    %1 = vector.load %arg2[%c0_1, %c0_2] : memref<9x512xf32, #tpu.memory_space<vmem>>, vector<9x512xf32>
    %c17_i32 = arith.constant 17 : i32
    %2 = tpu.dynamic_rotate %0 by %c17_i32 dim 1 : vector<8x512xf32>, i32 -> vector<8x512xf32>
    %3 = vector.extract_strided_slice %1 {offsets = [0, 0], sizes = [1, 512], strides = [1, 1]} : vector<9x512xf32> to vector<1x512xf32>
    %4 = vector.broadcast %3 : vector<1x512xf32> to vector<8x512xf32>
    %5 = arith.mulf %2, %4 : vector<8x512xf32>
    %c16_i32 = arith.constant 16 : i32
    %6 = tpu.dynamic_rotate %0 by %c16_i32 dim 1 : vector<8x512xf32>, i32 -> vector<8x512xf32>
    %7 = vector.extract_strided_slice %1 {offsets = [1, 0], sizes = [1, 512], strides = [1, 1]} : vector<9x512xf32> to vector<1x512xf32>
    %8 = vector.broadcast %7 : vector<1x512xf32> to vector<8x512xf32>
    %9 = arith.mulf %6, %8 : vector<8x512xf32>
    %c15_i32 = arith.constant 15 : i32
    %10 = tpu.dynamic_rotate %0 by %c15_i32 dim 1 : vector<8x512xf32>, i32 -> vector<8x512xf32>
    %11 = vector.extract_strided_slice %1 {offsets = [2, 0], sizes = [1, 512], strides = [1, 1]} : vector<9x512xf32> to vector<1x512xf32>
    %12 = vector.broadcast %11 : vector<1x512xf32> to vector<8x512xf32>
    %13 = arith.mulf %10, %12 : vector<8x512xf32>
    %c1_i32 = arith.constant 1 : i32
    %14 = tpu.dynamic_rotate %0 by %c1_i32 dim 1 : vector<8x512xf32>, i32 -> vector<8x512xf32>
    %15 = vector.extract_strided_slice %1 {offsets = [3, 0], sizes = [1, 512], strides = [1, 1]} : vector<9x512xf32> to vector<1x512xf32>
    %16 = vector.broadcast %15 : vector<1x512xf32> to vector<8x512xf32>
    %17 = arith.mulf %14, %16 : vector<8x512xf32>
    %c511_i32 = arith.constant 511 : i32
    %18 = tpu.dynamic_rotate %0 by %c511_i32 dim 1 : vector<8x512xf32>, i32 -> vector<8x512xf32>
    %19 = vector.extract_strided_slice %1 {offsets = [5, 0], sizes = [1, 512], strides = [1, 1]} : vector<9x512xf32> to vector<1x512xf32>
    %20 = vector.broadcast %19 : vector<1x512xf32> to vector<8x512xf32>
    %21 = arith.mulf %18, %20 : vector<8x512xf32>
    %c497_i32 = arith.constant 497 : i32
    %22 = tpu.dynamic_rotate %0 by %c497_i32 dim 1 : vector<8x512xf32>, i32 -> vector<8x512xf32>
    %23 = vector.extract_strided_slice %1 {offsets = [6, 0], sizes = [1, 512], strides = [1, 1]} : vector<9x512xf32> to vector<1x512xf32>
    %24 = vector.broadcast %23 : vector<1x512xf32> to vector<8x512xf32>
    %25 = arith.mulf %22, %24 : vector<8x512xf32>
    %c496_i32 = arith.constant 496 : i32
    %26 = tpu.dynamic_rotate %0 by %c496_i32 dim 1 : vector<8x512xf32>, i32 -> vector<8x512xf32>
    %27 = vector.extract_strided_slice %1 {offsets = [7, 0], sizes = [1, 512], strides = [1, 1]} : vector<9x512xf32> to vector<1x512xf32>
    %28 = vector.broadcast %27 : vector<1x512xf32> to vector<8x512xf32>
    %29 = arith.mulf %26, %28 : vector<8x512xf32>
    %c495_i32 = arith.constant 495 : i32
    %30 = tpu.dynamic_rotate %0 by %c495_i32 dim 1 : vector<8x512xf32>, i32 -> vector<8x512xf32>
    %31 = vector.extract_strided_slice %1 {offsets = [8, 0], sizes = [1, 512], strides = [1, 1]} : vector<9x512xf32> to vector<1x512xf32>
    %32 = vector.broadcast %31 : vector<1x512xf32> to vector<8x512xf32>
    %33 = arith.mulf %30, %32 : vector<8x512xf32>
    %34 = tpu.concatenate %5, %9, %13, %17, %0, %21, %25, %29, %33 in 0 : vector<8x512xf32>, vector<8x512xf32>, vector<8x512xf32>, vector<8x512xf32>, vector<8x512xf32>, vector<8x512xf32>, vector<8x512xf32>, vector<8x512xf32>, vector<8x512xf32> -> vector<72x512xf32>
    %c0_3 = arith.constant 0 : index
    %c0_4 = arith.constant 0 : index
    %c0_5 = arith.constant 0 : index
    %35 = vector.load %arg3[%c0_3, %c0_4, %c0_5] : memref<3x8x72xf32, #tpu.memory_space<vmem>>, vector<1x8x72xf32>
    %36 = vector.shape_cast %35 : vector<1x8x72xf32> to vector<8x72xf32>
    %cst = arith.constant dense<0.000000e+00> : vector<8x512xf32>
    %37 = tpu.matmul %36, %34, %cst {dimension_numbers = #tpu.dot_dimension_numbers<[1], [0], [0], [1], [0, 0, 1, 1], [], []>} : vector<8x72xf32>, vector<72x512xf32>, vector<8x512xf32> -> vector<8x512xf32>
    %c0_6 = arith.constant 0 : index
    %c0_7 = arith.constant 0 : index
    %c0_8 = arith.constant 0 : index
    %38 = vector.load %arg5[%c0_6, %c0_7, %c0_8] : memref<5x8x1xf32, #tpu.memory_space<vmem>>, vector<1x8x1xf32>
    %39 = vector.shape_cast %38 : vector<1x8x1xf32> to vector<8x1xf32>
    %40 = vector.broadcast %39 : vector<8x1xf32> to vector<8x512xf32>
    %41 = arith.addf %37, %40 : vector<8x512xf32>
    %cst_9 = arith.constant 0.000000e+00 : f32
    %42 = vector.broadcast %cst_9 : f32 to vector<8x512xf32>
    %43 = arith.maximumf %41, %42 : vector<8x512xf32>
    %c17_i32_10 = arith.constant 17 : i32
    %44 = tpu.dynamic_rotate %43 by %c17_i32_10 dim 1 : vector<8x512xf32>, i32 -> vector<8x512xf32>
    %45 = vector.extract_strided_slice %1 {offsets = [0, 0], sizes = [1, 512], strides = [1, 1]} : vector<9x512xf32> to vector<1x512xf32>
    %46 = vector.broadcast %45 : vector<1x512xf32> to vector<8x512xf32>
    %47 = arith.mulf %44, %46 : vector<8x512xf32>
    %c16_i32_11 = arith.constant 16 : i32
    %48 = tpu.dynamic_rotate %43 by %c16_i32_11 dim 1 : vector<8x512xf32>, i32 -> vector<8x512xf32>
    %49 = vector.extract_strided_slice %1 {offsets = [1, 0], sizes = [1, 512], strides = [1, 1]} : vector<9x512xf32> to vector<1x512xf32>
    %50 = vector.broadcast %49 : vector<1x512xf32> to vector<8x512xf32>
    %51 = arith.mulf %48, %50 : vector<8x512xf32>
    %c15_i32_12 = arith.constant 15 : i32
    %52 = tpu.dynamic_rotate %43 by %c15_i32_12 dim 1 : vector<8x512xf32>, i32 -> vector<8x512xf32>
    %53 = vector.extract_strided_slice %1 {offsets = [2, 0], sizes = [1, 512], strides = [1, 1]} : vector<9x512xf32> to vector<1x512xf32>
    %54 = vector.broadcast %53 : vector<1x512xf32> to vector<8x512xf32>
    %55 = arith.mulf %52, %54 : vector<8x512xf32>
    %c1_i32_13 = arith.constant 1 : i32
    %56 = tpu.dynamic_rotate %43 by %c1_i32_13 dim 1 : vector<8x512xf32>, i32 -> vector<8x512xf32>
    %57 = vector.extract_strided_slice %1 {offsets = [3, 0], sizes = [1, 512], strides = [1, 1]} : vector<9x512xf32> to vector<1x512xf32>
    %58 = vector.broadcast %57 : vector<1x512xf32> to vector<8x512xf32>
    %59 = arith.mulf %56, %58 : vector<8x512xf32>
    %c511_i32_14 = arith.constant 511 : i32
    %60 = tpu.dynamic_rotate %43 by %c511_i32_14 dim 1 : vector<8x512xf32>, i32 -> vector<8x512xf32>
    %61 = vector.extract_strided_slice %1 {offsets = [5, 0], sizes = [1, 512], strides = [1, 1]} : vector<9x512xf32> to vector<1x512xf32>
    %62 = vector.broadcast %61 : vector<1x512xf32> to vector<8x512xf32>
    %63 = arith.mulf %60, %62 : vector<8x512xf32>
    %c497_i32_15 = arith.constant 497 : i32
    %64 = tpu.dynamic_rotate %43 by %c497_i32_15 dim 1 : vector<8x512xf32>, i32 -> vector<8x512xf32>
    %65 = vector.extract_strided_slice %1 {offsets = [6, 0], sizes = [1, 512], strides = [1, 1]} : vector<9x512xf32> to vector<1x512xf32>
    %66 = vector.broadcast %65 : vector<1x512xf32> to vector<8x512xf32>
    %67 = arith.mulf %64, %66 : vector<8x512xf32>
    %c496_i32_16 = arith.constant 496 : i32
    %68 = tpu.dynamic_rotate %43 by %c496_i32_16 dim 1 : vector<8x512xf32>, i32 -> vector<8x512xf32>
    %69 = vector.extract_strided_slice %1 {offsets = [7, 0], sizes = [1, 512], strides = [1, 1]} : vector<9x512xf32> to vector<1x512xf32>
    %70 = vector.broadcast %69 : vector<1x512xf32> to vector<8x512xf32>
    %71 = arith.mulf %68, %70 : vector<8x512xf32>
    %c495_i32_17 = arith.constant 495 : i32
    %72 = tpu.dynamic_rotate %43 by %c495_i32_17 dim 1 : vector<8x512xf32>, i32 -> vector<8x512xf32>
    %73 = vector.extract_strided_slice %1 {offsets = [8, 0], sizes = [1, 512], strides = [1, 1]} : vector<9x512xf32> to vector<1x512xf32>
    %74 = vector.broadcast %73 : vector<1x512xf32> to vector<8x512xf32>
    %75 = arith.mulf %72, %74 : vector<8x512xf32>
    %76 = tpu.concatenate %47, %51, %55, %59, %43, %63, %67, %71, %75 in 0 : vector<8x512xf32>, vector<8x512xf32>, vector<8x512xf32>, vector<8x512xf32>, vector<8x512xf32>, vector<8x512xf32>, vector<8x512xf32>, vector<8x512xf32>, vector<8x512xf32> -> vector<72x512xf32>
    %c1 = arith.constant 1 : index
    %c0_18 = arith.constant 0 : index
    %c0_19 = arith.constant 0 : index
    %77 = vector.load %arg3[%c1, %c0_18, %c0_19] : memref<3x8x72xf32, #tpu.memory_space<vmem>>, vector<1x8x72xf32>
    %78 = vector.shape_cast %77 : vector<1x8x72xf32> to vector<8x72xf32>
    %cst_20 = arith.constant dense<0.000000e+00> : vector<8x512xf32>
    %79 = tpu.matmul %78, %76, %cst_20 {dimension_numbers = #tpu.dot_dimension_numbers<[1], [0], [0], [1], [0, 0, 1, 1], [], []>} : vector<8x72xf32>, vector<72x512xf32>, vector<8x512xf32> -> vector<8x512xf32>
    %c1_21 = arith.constant 1 : index
    %c0_22 = arith.constant 0 : index
    %c0_23 = arith.constant 0 : index
    %80 = vector.load %arg5[%c1_21, %c0_22, %c0_23] : memref<5x8x1xf32, #tpu.memory_space<vmem>>, vector<1x8x1xf32>
    %81 = vector.shape_cast %80 : vector<1x8x1xf32> to vector<8x1xf32>
    %82 = vector.broadcast %81 : vector<8x1xf32> to vector<8x512xf32>
    %83 = arith.addf %79, %82 : vector<8x512xf32>
    %cst_24 = arith.constant 0.000000e+00 : f32
    %84 = vector.broadcast %cst_24 : f32 to vector<8x512xf32>
    %85 = arith.maximumf %83, %84 : vector<8x512xf32>
    %c0_25 = arith.constant 0 : index
    %c0_26 = arith.constant 0 : index
    %c0_27 = arith.constant 0 : index
    %86 = vector.load %arg4[%c0_25, %c0_26, %c0_27] : memref<3x8x8xf32, #tpu.memory_space<vmem>>, vector<1x8x8xf32>
    %87 = vector.shape_cast %86 : vector<1x8x8xf32> to vector<8x8xf32>
    %cst_28 = arith.constant dense<0.000000e+00> : vector<8x512xf32>
    %88 = tpu.matmul %87, %85, %cst_28 {dimension_numbers = #tpu.dot_dimension_numbers<[1], [0], [0], [1], [0, 0, 1, 1], [], []>} : vector<8x8xf32>, vector<8x512xf32>, vector<8x512xf32> -> vector<8x512xf32>
    %c1_29 = arith.constant 1 : index
    %c0_30 = arith.constant 0 : index
    %c0_31 = arith.constant 0 : index
    %89 = vector.load %arg4[%c1_29, %c0_30, %c0_31] : memref<3x8x8xf32, #tpu.memory_space<vmem>>, vector<1x8x8xf32>
    %90 = vector.shape_cast %89 : vector<1x8x8xf32> to vector<8x8xf32>
    %cst_32 = arith.constant dense<0.000000e+00> : vector<8x512xf32>
    %91 = tpu.matmul %90, %0, %cst_32 {dimension_numbers = #tpu.dot_dimension_numbers<[1], [0], [0], [1], [0, 0, 1, 1], [], []>} : vector<8x8xf32>, vector<8x512xf32>, vector<8x512xf32> -> vector<8x512xf32>
    %92 = arith.addf %88, %91 : vector<8x512xf32>
    %c3 = arith.constant 3 : index
    %c0_33 = arith.constant 0 : index
    %c0_34 = arith.constant 0 : index
    %93 = vector.load %arg5[%c3, %c0_33, %c0_34] : memref<5x8x1xf32, #tpu.memory_space<vmem>>, vector<1x8x1xf32>
    %94 = vector.shape_cast %93 : vector<1x8x1xf32> to vector<8x1xf32>
    %95 = vector.broadcast %94 : vector<8x1xf32> to vector<8x512xf32>
    %96 = arith.addf %92, %95 : vector<8x512xf32>
    %cst_35 = arith.constant 0.000000e+00 : f32
    %97 = vector.broadcast %cst_35 : f32 to vector<8x512xf32>
    %98 = arith.maximumf %96, %97 : vector<8x512xf32>
    %c17_i32_36 = arith.constant 17 : i32
    %99 = tpu.dynamic_rotate %98 by %c17_i32_36 dim 1 : vector<8x512xf32>, i32 -> vector<8x512xf32>
    %100 = vector.extract_strided_slice %1 {offsets = [0, 0], sizes = [1, 512], strides = [1, 1]} : vector<9x512xf32> to vector<1x512xf32>
    %101 = vector.broadcast %100 : vector<1x512xf32> to vector<8x512xf32>
    %102 = arith.mulf %99, %101 : vector<8x512xf32>
    %c16_i32_37 = arith.constant 16 : i32
    %103 = tpu.dynamic_rotate %98 by %c16_i32_37 dim 1 : vector<8x512xf32>, i32 -> vector<8x512xf32>
    %104 = vector.extract_strided_slice %1 {offsets = [1, 0], sizes = [1, 512], strides = [1, 1]} : vector<9x512xf32> to vector<1x512xf32>
    %105 = vector.broadcast %104 : vector<1x512xf32> to vector<8x512xf32>
    %106 = arith.mulf %103, %105 : vector<8x512xf32>
    %c15_i32_38 = arith.constant 15 : i32
    %107 = tpu.dynamic_rotate %98 by %c15_i32_38 dim 1 : vector<8x512xf32>, i32 -> vector<8x512xf32>
    %108 = vector.extract_strided_slice %1 {offsets = [2, 0], sizes = [1, 512], strides = [1, 1]} : vector<9x512xf32> to vector<1x512xf32>
    %109 = vector.broadcast %108 : vector<1x512xf32> to vector<8x512xf32>
    %110 = arith.mulf %107, %109 : vector<8x512xf32>
    %c1_i32_39 = arith.constant 1 : i32
    %111 = tpu.dynamic_rotate %98 by %c1_i32_39 dim 1 : vector<8x512xf32>, i32 -> vector<8x512xf32>
    %112 = vector.extract_strided_slice %1 {offsets = [3, 0], sizes = [1, 512], strides = [1, 1]} : vector<9x512xf32> to vector<1x512xf32>
    %113 = vector.broadcast %112 : vector<1x512xf32> to vector<8x512xf32>
    %114 = arith.mulf %111, %113 : vector<8x512xf32>
    %c511_i32_40 = arith.constant 511 : i32
    %115 = tpu.dynamic_rotate %98 by %c511_i32_40 dim 1 : vector<8x512xf32>, i32 -> vector<8x512xf32>
    %116 = vector.extract_strided_slice %1 {offsets = [5, 0], sizes = [1, 512], strides = [1, 1]} : vector<9x512xf32> to vector<1x512xf32>
    %117 = vector.broadcast %116 : vector<1x512xf32> to vector<8x512xf32>
    %118 = arith.mulf %115, %117 : vector<8x512xf32>
    %c497_i32_41 = arith.constant 497 : i32
    %119 = tpu.dynamic_rotate %98 by %c497_i32_41 dim 1 : vector<8x512xf32>, i32 -> vector<8x512xf32>
    %120 = vector.extract_strided_slice %1 {offsets = [6, 0], sizes = [1, 512], strides = [1, 1]} : vector<9x512xf32> to vector<1x512xf32>
    %121 = vector.broadcast %120 : vector<1x512xf32> to vector<8x512xf32>
    %122 = arith.mulf %119, %121 : vector<8x512xf32>
    %c496_i32_42 = arith.constant 496 : i32
    %123 = tpu.dynamic_rotate %98 by %c496_i32_42 dim 1 : vector<8x512xf32>, i32 -> vector<8x512xf32>
    %124 = vector.extract_strided_slice %1 {offsets = [7, 0], sizes = [1, 512], strides = [1, 1]} : vector<9x512xf32> to vector<1x512xf32>
    %125 = vector.broadcast %124 : vector<1x512xf32> to vector<8x512xf32>
    %126 = arith.mulf %123, %125 : vector<8x512xf32>
    %c495_i32_43 = arith.constant 495 : i32
    %127 = tpu.dynamic_rotate %98 by %c495_i32_43 dim 1 : vector<8x512xf32>, i32 -> vector<8x512xf32>
    %128 = vector.extract_strided_slice %1 {offsets = [8, 0], sizes = [1, 512], strides = [1, 1]} : vector<9x512xf32> to vector<1x512xf32>
    %129 = vector.broadcast %128 : vector<1x512xf32> to vector<8x512xf32>
    %130 = arith.mulf %127, %129 : vector<8x512xf32>
    %131 = tpu.concatenate %102, %106, %110, %114, %98, %118, %122, %126, %130 in 0 : vector<8x512xf32>, vector<8x512xf32>, vector<8x512xf32>, vector<8x512xf32>, vector<8x512xf32>, vector<8x512xf32>, vector<8x512xf32>, vector<8x512xf32>, vector<8x512xf32> -> vector<72x512xf32>
    %c2 = arith.constant 2 : index
    %c0_44 = arith.constant 0 : index
    %c0_45 = arith.constant 0 : index
    %132 = vector.load %arg3[%c2, %c0_44, %c0_45] : memref<3x8x72xf32, #tpu.memory_space<vmem>>, vector<1x8x72xf32>
    %133 = vector.shape_cast %132 : vector<1x8x72xf32> to vector<8x72xf32>
    %cst_46 = arith.constant dense<0.000000e+00> : vector<8x512xf32>
    %134 = tpu.matmul %133, %131, %cst_46 {dimension_numbers = #tpu.dot_dimension_numbers<[1], [0], [0], [1], [0, 0, 1, 1], [], []>} : vector<8x72xf32>, vector<72x512xf32>, vector<8x512xf32> -> vector<8x512xf32>
    %c2_47 = arith.constant 2 : index
    %c0_48 = arith.constant 0 : index
    %c0_49 = arith.constant 0 : index
    %135 = vector.load %arg5[%c2_47, %c0_48, %c0_49] : memref<5x8x1xf32, #tpu.memory_space<vmem>>, vector<1x8x1xf32>
    %136 = vector.shape_cast %135 : vector<1x8x1xf32> to vector<8x1xf32>
    %137 = vector.broadcast %136 : vector<8x1xf32> to vector<8x512xf32>
    %138 = arith.addf %134, %137 : vector<8x512xf32>
    %cst_50 = arith.constant 0.000000e+00 : f32
    %139 = vector.broadcast %cst_50 : f32 to vector<8x512xf32>
    %140 = arith.maximumf %138, %139 : vector<8x512xf32>
    %c2_51 = arith.constant 2 : index
    %c0_52 = arith.constant 0 : index
    %c0_53 = arith.constant 0 : index
    %141 = vector.load %arg4[%c2_51, %c0_52, %c0_53] : memref<3x8x8xf32, #tpu.memory_space<vmem>>, vector<1x8x8xf32>
    %142 = vector.shape_cast %141 : vector<1x8x8xf32> to vector<8x8xf32>
    %cst_54 = arith.constant dense<0.000000e+00> : vector<8x512xf32>
    %143 = tpu.matmul %142, %140, %cst_54 {dimension_numbers = #tpu.dot_dimension_numbers<[1], [0], [0], [1], [0, 0, 1, 1], [], []>} : vector<8x8xf32>, vector<8x512xf32>, vector<8x512xf32> -> vector<8x512xf32>
    %c4 = arith.constant 4 : index
    %c0_55 = arith.constant 0 : index
    %c0_56 = arith.constant 0 : index
    %144 = vector.load %arg5[%c4, %c0_55, %c0_56] : memref<5x8x1xf32, #tpu.memory_space<vmem>>, vector<1x8x1xf32>
    %145 = vector.shape_cast %144 : vector<1x8x1xf32> to vector<8x1xf32>
    %146 = vector.broadcast %145 : vector<8x1xf32> to vector<8x512xf32>
    %147 = arith.addf %143, %146 : vector<8x512xf32>
    %cst_57 = arith.constant 0.000000e+00 : f32
    %148 = vector.broadcast %cst_57 : f32 to vector<8x512xf32>
    %149 = arith.maximumf %147, %148 : vector<8x512xf32>
    %150 = vector.extract_strided_slice %0 {offsets = [0, 0], sizes = [4, 512], strides = [1, 1]} : vector<8x512xf32> to vector<4x512xf32>
    %151 = vector.extract_strided_slice %149 {offsets = [0, 0], sizes = [4, 512], strides = [1, 1]} : vector<8x512xf32> to vector<4x512xf32>
    %152 = arith.addf %150, %151 : vector<4x512xf32>
    %c0_58 = arith.constant 0 : index
    %c0_59 = arith.constant 0 : index
    %153 = vector.load %arg6[%c0_58, %c0_59] : memref<4x512xf32, #tpu.memory_space<vmem>>, vector<4x512xf32>
    tpu.vector_store %arg6[%c0_58, %c0_59], %152 {strides = array<i32>} : memref<4x512xf32, #tpu.memory_space<vmem>>, vector<4x512xf32>,
    return
  }
  func.func @transform_0(%arg0: i32) -> (i32, i32) {
    %c0_i32 = arith.constant 0 : i32
    %c0_i32_0 = arith.constant 0 : i32
    return %c0_i32, %arg0 : i32, i32
  }
  func.func @transform_1(%arg0: i32) -> (i32, i32) {
    %c0_i32 = arith.constant 0 : i32
    %c0_i32_0 = arith.constant 0 : i32
    %c0_i32_1 = arith.constant 0 : i32
    return %c0_i32, %c0_i32_0 : i32, i32
  }
  func.func @transform_2(%arg0: i32) -> (i32, i32, i32) {
    %c0_i32 = arith.constant 0 : i32
    %c0_i32_0 = arith.constant 0 : i32
    %c0_i32_1 = arith.constant 0 : i32
    %c0_i32_2 = arith.constant 0 : i32
    return %c0_i32, %c0_i32_0, %c0_i32_1 : i32, i32, i32
  }
  func.func @transform_3(%arg0: i32) -> (i32, i32, i32) {
    %c0_i32 = arith.constant 0 : i32
    %c0_i32_0 = arith.constant 0 : i32
    %c0_i32_1 = arith.constant 0 : i32
    %c0_i32_2 = arith.constant 0 : i32
    return %c0_i32, %c0_i32_0, %c0_i32_1 : i32, i32, i32
  }
  func.func @transform_4(%arg0: i32) -> (i32, i32, i32) {
    %c0_i32 = arith.constant 0 : i32
    %c0_i32_0 = arith.constant 0 : i32
    %c0_i32_1 = arith.constant 0 : i32
    %c0_i32_2 = arith.constant 0 : i32
    return %c0_i32, %c0_i32_0, %c0_i32_1 : i32, i32, i32
  }
  func.func @transform_5(%arg0: i32) -> (i32, i32) {
    %c0_i32 = arith.constant 0 : i32
    %c0_i32_0 = arith.constant 0 : i32
    return %c0_i32, %arg0 : i32, i32
  }
}

</mosaic_0001>

<bundles_post_ra>
// kernel: tpu_custom_call.1
= control target key start
LH: loop header
LB: loop body
LE: loop exit
PB: predicated region body
PF: predicated region fallthrough
CT: control target
= control target key end

     0   :  { %10 = vsyncpa [#allocation3], 0  ;;  %s2564_s0 = inlined_call_operand.vmem [shape: f32[8,512], index: 0, kind: input, shape index: {}]   ;;  %s2565_s1 = inlined_call_operand.hbm [shape: f32[9,512], index: 1, kind: input, shape index: {}]   ;;  %s2566_s2 = inlined_call_operand.hbm [shape: f32[3,8,72], index: 2, kind: input, shape index: {}]   ;;  %s2567_s3 = inlined_call_operand.vmem [shape: f32[3,8,8], index: 3, kind: input, shape index: {}]   ;;  %s2568_s4 = inlined_call_operand.vmem [shape: f32[5,8,1], index: 4, kind: input, shape index: {}]   ;;  %s2569_s5 = inlined_call_operand.hbm [shape: f32[4,512], index: 5, kind: output, shape index: {}]  }
   0x1   :  { %11 = vsyncpa [#allocation6], 0 }
   0x2   :  { %12 = vsyncpa [#allocation4], 0  ;;  %s1770_s18 = smov [#allocation2]   ;;  %s1698_s22 = scalar_lea.hbm %s2565_s1, 1024 }
   0x3   :  { %s20_s19 = sshll.u32 %s1770_s18, 4  ;;  %p1699_p0 = scmp.ne.s32.totalorder %s2565_s1, %s1698_s22  ;;  %s21_s19 = int_to_ptr.vmem [resolvable:$true] %s20_s19 }
   0x4   :  { %p1702_p1 = scmp.lt.u32.totalorder %s1698_s22, %s2565_s1 }
   0x6   :  { %p1704_p2 = pnand %p1702_p1, %p1699_p0 }
   0x8   :  { %1707 = shalt.err (!%p1704_p2)
}
   0x9   :  { %s1708_s27 = scalar_lea.vmem %s21_s19, 1024  ;;  %p1713_p4 = scmp.lt.s32.totalorder %s21_s19, %s21_s19 }
   0xa   :  { %p1709_p3 = scmp.ne.s32.totalorder %s21_s19, %s1708_s27  ;;  %p1714_p5 = scmp.lt.s32.totalorder %s1708_s27, %s1708_s27 }
   0xc   :  { %p1715_p6 = por %p1714_p5, %p1713_p4 }
   0xe   :  { %p1716_p7 = pnand %p1715_p6, %p1709_p3 }
  0x10   :  { %1719 = shalt.err (!%p1716_p7)
}
  0x11   :  { %s1771_s28 = smov 512   ;;  %s1772_s29 = smov 32  }
  0x12   :  { %26 = dma.hbm_to_vmem [thread:$0]  %s2565_s1, 1024, %s21_s19, [#allocation3], %s1771_s28, %s1771_s28, %s1772_s29  }
  0x13   :  { %s1773_s7 = smov [#allocation5]   ;;  %s1720_s11 = scalar_lea.hbm %s2566_s2, 384 }
  0x14   :  { %s32_s8 = sshll.u32 %s1773_s7, 4  ;;  %p1721_p8 = scmp.ne.s32.totalorder %s2566_s2, %s1720_s11  ;;  %s33_s8 = int_to_ptr.vmem [resolvable:$true] %s32_s8 }
  0x15   :  { %p1724_p9 = scmp.lt.u32.totalorder %s1720_s11, %s2566_s2 }
  0x17   :  { %p1726_p10 = pnand %p1724_p9, %p1721_p8 }
  0x19   :  { %1729 = shalt.err (!%p1726_p10)
}
  0x1a   :  { %s1730_s16 = scalar_lea.vmem %s33_s8, 384  ;;  %p1735_p12 = scmp.lt.s32.totalorder %s33_s8, %s33_s8 }
  0x1b   :  { %p1731_p11 = scmp.ne.s32.totalorder %s33_s8, %s1730_s16  ;;  %p1736_p13 = scmp.lt.s32.totalorder %s1730_s16, %s1730_s16 }
  0x1d   :  { %p1737_p0 = por %p1736_p13, %p1735_p12 }
  0x1f   :  { %p1738_p1 = pnand %p1737_p0, %p1731_p11 }
  0x21   :  { %1741 = shalt.err (!%p1738_p1)
}
  0x22   :  { %s1774_s1 = smov 128   ;;  %s1775_s17 = smov 8  }
  0x23   :  { %38 = dma.hbm_to_vmem [thread:$0]  %s2566_s2, 384, %s33_s8, [#allocation6], %s1774_s1, %s1774_s1, %s1775_s17  }
  0x24   :  { %1764 = dma.done.wait [#allocation3], 1024  }
  0x25   :  { %1765 = vsyncadd [#allocation3], 4294966272 }
  0x26   :  { %1766 = dma.done.wait [#allocation6], 384  }
  0x27   :  { %1767 = vsyncadd [#allocation6], 4294966912  ;;  %v1844_v0 = vld [vmem:[%s2564_s0 + $0x10] sm:$0xff]  ;;  %v1849_v1 = vld [vmem:[%s2564_s0] sm:$0xff]  ;;  %s1776_s24 = smov 17   ;;  %s1777_s28 = smov 16   ;;  %v69_v7 = vlaneseq }
  0x28   :  { %65 = vrot.lane.b32.xlu1 %v1844_v0, %s1776_s24  ;;  %61 = vrot.lane.b32.xlu0 %v1849_v1, %s1776_s24  ;;  %v1858_v2 = vld [vmem:[%s2564_s0 + $0x18] sm:$0xff]  ;;  %v1863_v3 = vld [vmem:[%s2564_s0 + $0x8] sm:$0xff]  ;;  %s1778_s29 = smov 15   ;;  %s1779_s30 = smov 1   ;;  %v1783_v4 = vmov 0.0   ;;  %v1784_v5 = vmov 0  }
  0x29   :  { %s1780_s6 = smov 127   ;;  %s1781_s7 = smov 113   ;;  %402 = vmatprep.mubr.f32.mxu0 %v1783_v4  ;;  %473 = vmatprep.mubr.f32.mxu1 %v1783_v4  ;;  %v328_v6 = vld [vmem:[%s2568_s4] sm:$0xff]  ;;  %v1930_v8 = vshrl.u32 %v69_v7, 7  ;;  %v1932_v11 = vand.u32 127, %v69_v7  ;;  %v1936_v14 = vld [vmem:[#allocation2 + $0x8] sm:$0xff] }
  0x2a   :  { %s1782_s8 = smov 112   ;;  %1692 = vset.pattern.permute.xlu0 %v1784_v5  ;;  %1693 = vset.pattern.permute.xlu1 %v1784_v5  ;;  %s1785_s9 = smov 111   ;;  %v1939_v17 = vld [vmem:[#allocation2 + $0x10] sm:$0xff]  ;;  %v1942_v18 = vld [vmem:[#allocation2] sm:$0xff]  ;;  %v1950_v21 = vld [vmem:[#allocation2 + $0x18] sm:$0xff]  ;;  %vm334_vm8 = vcmask 588800  }
  0x2b   :  { %v78_v12 = vsub.s32 0, %v1930_v8  ;;  %v111_v13 = vsub.s32 1, %v1930_v8  ;;  %vm71_vm0 = vcmp.lt.s32.totalorder %v1932_v11, 17  ;;  %vm104_vm1 = vcmp.lt.s32.totalorder %v1932_v11, 16 }
  0x2c   :  { %67 = vrot.lane.b32.xlu1 %v1858_v2, %s1776_s24  ;;  %63 = vrot.lane.b32.xlu0 %v1863_v3, %s1776_s24  ;;  %v144_v54 = vsub.s32 2, %v1930_v8  ;;  %v177_v55 = vsub.s32 3, %v1930_v8  ;;  %vm137_vm2 = vcmp.lt.s32.totalorder %v1932_v11, 15  ;;  %vm170_vm3 = vcmp.lt.s32.totalorder %v1932_v11, 1 }
  0x2d   :  { %v1945_v19 = vrot.slane %v1936_v14, %v78_v12  ;;  %v1948_v20 = vrot.slane %v1936_v14, %v111_v13  ;;  %v1955_v23 = vrot.slane %v1939_v17, %v78_v12  ;;  %v1958_v26 = vrot.slane %v1942_v18, %v111_v13 }
  0x2e   :  { %v1961_v27 = vrot.slane %v1939_v17, %v111_v13  ;;  %v1968_v30 = vrot.slane %v1942_v18, %v78_v12  ;;  %v1971_v31 = vrot.slane %v1950_v21, %v78_v12  ;;  %v1978_v35 = vrot.slane %v1950_v21, %v111_v13 }
  0x2f   :  { %v1998_v58 = vrot.slane %v1936_v14, %v144_v54  ;;  %v2002_v59 = vrot.slane %v1936_v14, %v177_v55  ;;  %v2007_v61 = vrot.slane %v1942_v18, %v144_v54  ;;  %v2010_v62 = vrot.slane %v1939_v17, %v144_v54 }
  0x30   :  { %98 = vrot.lane.b32.xlu1 %v1863_v3, %s1777_s28  ;;  %96 = vrot.lane.b32.xlu0 %v1849_v1, %s1777_s28  ;;  %v2013_v63 = vrot.slane %v1950_v21, %v144_v54  ;;  %v2023_v12 = vrot.slane %v1939_v17, %v177_v55  ;;  %vm203_vm4 = vcmp.lt.s32.totalorder %v1932_v11, 127  ;;  %vm269_vm5 = vcmp.lt.s32.totalorder %v1932_v11, 112 }
  0x31   :  { %vm236_vm6 = vcmp.lt.s32.totalorder %v1932_v11, 113  ;;  %vm302_vm7 = vcmp.lt.s32.totalorder %v1932_v11, 111  ;;  %vm773_vm9 = vcmask 64512  }
  0x34   :  { %102 = vrot.lane.b32.xlu1 %v1858_v2, %s1777_s28  ;;  %100 = vrot.lane.b32.xlu0 %v1844_v0, %s1777_s28 }
  0x38   :  { %131 = vrot.lane.b32.xlu1 %v1863_v3, %s1778_s29  ;;  %129 = vrot.lane.b32.xlu0 %v1849_v1, %s1778_s29 }
  0x3c   :  { %135 = vrot.lane.b32.xlu1 %v1858_v2, %s1778_s29  ;;  %133 = vrot.lane.b32.xlu0 %v1844_v0, %s1778_s29 }
  0x40   :  { %164 = vrot.lane.b32.xlu1 %v1863_v3, %s1779_s30  ;;  %162 = vrot.lane.b32.xlu0 %v1849_v1, %s1779_s30 }
  0x44   :  { %168 = vrot.lane.b32.xlu1 %v1858_v2, %s1779_s30  ;;  %166 = vrot.lane.b32.xlu0 %v1844_v0, %s1779_s30 }
  0x48   :  { %197 = vrot.lane.b32.xlu1 %v1863_v3, %s1780_s6  ;;  %195 = vrot.lane.b32.xlu0 %v1849_v1, %s1780_s6 }
  0x4c   :  { %201 = vrot.lane.b32.xlu1 %v1858_v2, %s1780_s6  ;;  %199 = vrot.lane.b32.xlu0 %v1844_v0, %s1780_s6 }
  0x50   :  { %230 = vrot.lane.b32.xlu1 %v1863_v3, %s1781_s7  ;;  %228 = vrot.lane.b32.xlu0 %v1849_v1, %s1781_s7 }
  0x54   :  { %234 = vrot.lane.b32.xlu1 %v1858_v2, %s1781_s7  ;;  %232 = vrot.lane.b32.xlu0 %v1844_v0, %s1781_s7 }
  0x58   :  { %263 = vrot.lane.b32.xlu1 %v1863_v3, %s1782_s8  ;;  %261 = vrot.lane.b32.xlu0 %v1849_v1, %s1782_s8 }
  0x5c   :  { %267 = vrot.lane.b32.xlu1 %v1858_v2, %s1782_s8  ;;  %265 = vrot.lane.b32.xlu0 %v1844_v0, %s1782_s8 }
  0x60   :  { %296 = vrot.lane.b32.xlu1 %v1863_v3, %s1785_s9  ;;  %294 = vrot.lane.b32.xlu0 %v1849_v1, %s1785_s9 }
  0x64   :  { %300 = vrot.lane.b32.xlu1 %v1858_v2, %s1785_s9  ;;  %298 = vrot.lane.b32.xlu0 %v1844_v0, %s1785_s9 }
  0x68   :  { %331 = vperm.xlu0 %1692, %v328_v6  }
  0x9a   :  { %v66_v9 = vpop.permute.xlu1 %65  ;;  %v62_v10 = vpop.permute.xlu0 %61 }
  0x9e   :  { %v68_v15 = vpop.permute.xlu1 %67  ;;  %v64_v16 = vpop.permute.xlu0 %63 }
  0x9f   :  { %v74_v22 = vsel %vm71_vm0, %v62_v10, %v64_v16  ;;  %v73_v28 = vsel %vm71_vm0, %v64_v16, %v66_v9  ;;  %v75_v32 = vsel %vm71_vm0, %v68_v15, %v62_v10  ;;  %v72_v36 = vsel %vm71_vm0, %v66_v9, %v68_v15 }
  0xa0   :  { %v93_v33 = vmul.f32 %v1945_v19, %v74_v22  ;;  %v94_v37 = vmul.f32 %v1955_v23, %v73_v28  ;;  %v92_v44 = vmul.f32 %v1968_v30, %v75_v32  ;;  %v95_v47 = vmul.f32 %v1971_v31, %v72_v36 }
  0xa1   :  { %v2020_v10 = vrot.slane %v1942_v18, %v177_v55  ;;  %v2030_v22 = vrot.slane %v1950_v21, %v177_v55 }
  0xa2   :  { %v99_v24 = vpop.permute.xlu1 %98  ;;  %v97_v25 = vpop.permute.xlu0 %96 }
  0xa3   :  { %v107_v29 = vsel %vm104_vm1, %v97_v25, %v99_v24 }
  0xa4   :  { %v126_v34 = vmul.f32 %v1948_v20, %v107_v29 }
  0xa6   :  { %v103_v38 = vpop.permute.xlu1 %102  ;;  %v101_v39 = vpop.permute.xlu0 %100  ;;  %v1575_v40 = vpack.c.bf16 %v126_v34, %v93_v33  ;;  %v210_v33 = vsub.s32 5, %v1930_v8 }
  0xa7   :  { %v108_v41 = vsel %vm104_vm1, %v103_v38, %v97_v25  ;;  %v105_v42 = vsel %vm104_vm1, %v101_v39, %v103_v38  ;;  %v106_v43 = vsel %vm104_vm1, %v99_v24, %v101_v39 }
  0xa8   :  { %v125_v45 = vmul.f32 %v1958_v26, %v108_v41  ;;  %v127_v46 = vmul.f32 %v1961_v27, %v106_v43  ;;  %1576 = vmatprep.subr.bf16.mxu0 %v1575_v40  ;;  %v128_v48 = vmul.f32 %v1978_v35, %v105_v42 }
  0xaa   :  { %v132_v49 = vpop.permute.xlu1 %131  ;;  %v130_v50 = vpop.permute.xlu0 %129  ;;  %v1577_v51 = vpack.c.bf16 %v125_v45, %v92_v44  ;;  %v1591_v52 = vpack.c.bf16 %v128_v48, %v95_v47  ;;  %v1593_v53 = vpack.c.bf16 %v127_v46, %v94_v37  ;;  %v2049_v48 = vrot.slane %v1942_v18, %v210_v33 }
  0xab   :  { %v140_v60 = vsel %vm137_vm2, %v130_v50, %v132_v49 }
  0xac   :  { %1578 = vmatpush1.bf16.msra.mxu0 %v1577_v51  ;;  %1592 = vmatprep.subr.bf16.mxu1 %v1591_v52  ;;  %v159_v13 = vmul.f32 %v1998_v58, %v140_v60  ;;  %v2057_v51 = vrot.slane %v1936_v14, %v210_v33  ;;  %v2060_v52 = vrot.slane %v1939_v17, %v210_v33 }
  0xad   :  { %1594 = vmatpush1.bf16.msra.mxu1 %v1593_v53 }
  0xae   :  { %v136_v56 = vpop.permute.xlu1 %135  ;;  %v134_v57 = vpop.permute.xlu0 %133 }
  0xaf   :  { %v141_v7 = vsel %vm137_vm2, %v136_v56, %v130_v50  ;;  %v139_v15 = vsel %vm137_vm2, %v132_v49, %v134_v57  ;;  %v138_v24 = vsel %vm137_vm2, %v134_v57, %v136_v56  ;;  %v2052_v49 = vrot.slane %v1950_v21, %v210_v33 }
  0xb0   :  { %v158_v25 = vmul.f32 %v2007_v61, %v141_v7  ;;  %v160_v34 = vmul.f32 %v2010_v62, %v139_v15  ;;  %v161_v39 = vmul.f32 %v2013_v63, %v138_v24  ;;  %v243_v33 = vsub.s32 6, %v1930_v8 }
  0xb2   :  { %v165_v5 = vpop.permute.xlu1 %164  ;;  %v163_v6 = vpop.permute.xlu0 %162 }
  0xb3   :  { %v173_v9 = vsel %vm170_vm3, %v163_v6, %v165_v5 }
  0xb4   :  { %v192_v16 = vmul.f32 %v2002_v59, %v173_v9 }
  0xb6   :  { %v169_v28 = vpop.permute.xlu1 %168  ;;  %v167_v29 = vpop.permute.xlu0 %166  ;;  %v1579_v32 = vpack.c.bf16 %v192_v16, %v159_v13 }
  0xb7   :  { %v174_v36 = vsel %vm170_vm3, %v169_v28, %v163_v6  ;;  %v171_v37 = vsel %vm170_vm3, %v167_v29, %v169_v28  ;;  %v172_v38 = vsel %vm170_vm3, %v165_v5, %v167_v29 }
  0xb8   :  { %v191_v40 = vmul.f32 %v2020_v10, %v174_v36  ;;  %v193_v41 = vmul.f32 %v2023_v12, %v172_v38  ;;  %v194_v42 = vmul.f32 %v2030_v22, %v171_v37  ;;  %1580 = vmatprep.subr.bf16.mxu0 %v1579_v32  ;;  %v276_v32 = vsub.s32 7, %v1930_v8 }
  0xb9   :  { %v2084_v36 = vrot.slane %v1936_v14, %v243_v33 }
  0xba   :  { %v198_v43 = vpop.permute.xlu1 %197  ;;  %v196_v44 = vpop.permute.xlu0 %195  ;;  %v1581_v45 = vpack.c.bf16 %v191_v40, %v158_v25  ;;  %v1595_v46 = vpack.c.bf16 %v194_v42, %v161_v39  ;;  %v1597_v47 = vpack.c.bf16 %v193_v41, %v160_v34  ;;  %v2081_v34 = vrot.slane %v1950_v21, %v243_v33 }
  0xbb   :  { %v206_v50 = vsel %vm203_vm4, %v196_v44, %v198_v43  ;;  %v2089_v40 = vrot.slane %v1939_v17, %v243_v33  ;;  %v2094_v41 = vrot.slane %v1942_v18, %v276_v32 }
  0xbc   :  { %1582 = vmatpush1.bf16.msra.mxu0 %v1581_v45  ;;  %1596 = vmatprep.subr.bf16.mxu1 %v1595_v46  ;;  %v224_v55 = vmul.f32 %v2049_v48, %v206_v50  ;;  %v2105_v45 = vrot.slane %v1939_v17, %v276_v32  ;;  %v2108_v46 = vrot.slane %v1942_v18, %v243_v33  ;;  %v2135_v33 = vld [vmem:[#allocation2 + $0x20] ss:$0 sm:$0xff] }
  0xbd   :  { %1598 = vmatpush1.bf16.msra.mxu1 %v1597_v47 }
  0xbe   :  { %v202_v53 = vpop.permute.xlu1 %201  ;;  %v200_v54 = vpop.permute.xlu0 %199  ;;  %v1585_v25 = vpack.c.bf16 %v224_v55, %v1849_v1 }
  0xbf   :  { %v207_v56 = vsel %vm203_vm4, %v202_v53, %v196_v44  ;;  %v204_v57 = vsel %vm203_vm4, %v200_v54, %v202_v53  ;;  %v205_v60 = vsel %vm203_vm4, %v198_v43, %v200_v54  ;;  %v2099_v43 = vrot.slane %v1950_v21, %v276_v32 }
  0xc0   :  { %v227_v5 = vmul.f32 %v2052_v49, %v207_v56  ;;  %v225_v6 = vmul.f32 %v2057_v51, %v205_v60  ;;  %v226_v7 = vmul.f32 %v2060_v52, %v204_v57  ;;  %v2102_v44 = vrot.slane %v1936_v14, %v276_v32  ;;  %v2133_v32 = vld [vmem:[#allocation2 + $0x30] ss:$0 sm:$0xff] }
  0xc2   :  { %v231_v9 = vpop.permute.xlu1 %230  ;;  %v229_v13 = vpop.permute.xlu0 %228  ;;  %v1583_v15 = vpack.c.bf16 %v225_v6, %v1863_v3  ;;  %v1599_v16 = vpack.c.bf16 %v227_v5, %v1858_v2  ;;  %v1601_v24 = vpack.c.bf16 %v226_v7, %v1844_v0 }
  0xc3   :  { %v239_v50 = vsel %vm236_vm6, %v229_v13, %v231_v9 }
  0xc4   :  { %1584 = vmatprep.subr.bf16.mxu0 %v1583_v15  ;;  %1600 = vmatprep.subr.bf16.mxu1 %v1599_v16  ;;  %v257_v7 = vmul.f32 %v2108_v46, %v239_v50 }
  0xc5   :  { %1586 = vmatpush1.bf16.msra.mxu0 %v1585_v25  ;;  %1602 = vmatpush1.bf16.msra.mxu1 %v1601_v24 }
  0xc6   :  { %v235_v28 = vpop.permute.xlu1 %234  ;;  %v233_v29 = vpop.permute.xlu0 %232 }
  0xc7   :  { %v240_v39 = vsel %vm236_vm6, %v235_v28, %v229_v13  ;;  %v238_v8 = vsel %vm236_vm6, %v231_v9, %v233_v29  ;;  %v237_v47 = vsel %vm236_vm6, %v233_v29, %v235_v28  ;;  %v2129_v28 = vld [vmem:[#allocation2 + $0x38] ss:$0 sm:$0xff]  ;;  %v2131_v29 = vld [vmem:[#allocation2 + $0x28] ss:$0 sm:$0xff] }
  0xc8   :  { %v260_v53 = vmul.f32 %v2081_v34, %v240_v39  ;;  %v258_v21 = vmul.f32 %v2084_v36, %v238_v8  ;;  %v259_v57 = vmul.f32 %v2089_v40, %v237_v47 }
  0xca   :  { %v264_v37 = vpop.permute.xlu1 %263  ;;  %v262_v38 = vpop.permute.xlu0 %261 }
  0xcb   :  { %v272_v42 = vsel %vm269_vm5, %v262_v38, %v264_v37 }
  0xcc   :  { %v290_v14 = vmul.f32 %v2094_v41, %v272_v42 }
  0xce   :  { %v268_v54 = vpop.permute.xlu1 %267  ;;  %v266_v55 = vpop.permute.xlu0 %265  ;;  %v1589_v25 = vpack.c.bf16 %v290_v14, %v257_v7 }
  0xcf   :  { %v273_v17 = vsel %vm269_vm5, %v268_v54, %v262_v38  ;;  %v270_v18 = vsel %vm269_vm5, %v266_v55, %v268_v54  ;;  %v271_v56 = vsel %vm269_vm5, %v264_v37, %v266_v55  ;;  %v327_v55 = vld [vmem:[#allocation5] sm:$0xff] }
  0xd0   :  { %v293_v60 = vmul.f32 %v2099_v43, %v273_v17  ;;  %v291_v5 = vmul.f32 %v2102_v44, %v271_v56  ;;  %v292_v6 = vmul.f32 %v2105_v45, %v270_v18 }
  0xd2   :  { %v297_v9 = vpop.permute.xlu1 %296  ;;  %v295_v13 = vpop.permute.xlu0 %294  ;;  %v1587_v15 = vpack.c.bf16 %v291_v5, %v258_v21  ;;  %v1603_v16 = vpack.c.bf16 %v293_v60, %v260_v53  ;;  %v1605_v24 = vpack.c.bf16 %v292_v6, %v259_v57 }
  0xd3   :  { %v305_v37 = vsel %vm302_vm7, %v295_v13, %v297_v9 }
  0xd4   :  { %1588 = vmatprep.subr.bf16.mxu0 %v1587_v15  ;;  %1604 = vmatprep.subr.bf16.mxu1 %v1603_v16  ;;  %v323_v54 = vmul.f32 %v2135_v33, %v305_v37 }
  0xd5   :  { %1590 = vmatpush1.bf16.msra.mxu0 %v1589_v25  ;;  %1606 = vmatpush1.bf16.msra.mxu1 %v1605_v24  ;;  %v1559_v24 = vld [vmem:[%s2568_s4 + $0x8] sm:$0xff] }
  0xd6   :  { %v301_v38 = vpop.permute.xlu1 %300  ;;  %v299_v39 = vpop.permute.xlu0 %298 }
  0xd7   :  { %v306_v8 = vsel %vm302_vm7, %v301_v38, %v295_v13  ;;  %v303_v42 = vsel %vm302_vm7, %v299_v39, %v301_v38  ;;  %v304_v47 = vsel %vm302_vm7, %v297_v9, %v299_v39 }
  0xd8   :  { %v326_v50 = vmul.f32 %v2129_v28, %v306_v8  ;;  %v324_v53 = vmul.f32 %v2131_v29, %v304_v47  ;;  %v325_v21 = vmul.f32 %v2133_v32, %v303_v42 }
  0xda   :  { %354 = vmatprep.subr.mxu0 %v324_v53  ;;  %425 = vmatprep.subr.mxu1 %v326_v50 }
  0xdb   :  { %355 = vmatpush1.msra.mxu0 %v323_v54  ;;  %426 = vmatpush1.msra.mxu1 %v325_v21 }
  0xdc   :  { %1557 = vmatmul.mubr.msk.f32.vlgmr.msra.gmra.mrb[0].mxu0 %vm334_vm8, %v327_v55  ;;  %1558 = vmatmul.mubr.msk.f32.vlgmr.msra.gmra.mrb[0].mxu1 %vm334_vm8, %v327_v55 }
  0xdd   :  { %688 = vmatprep.mubr.f32.mxu0 %v1783_v4  ;;  %759 = vmatprep.mubr.f32.mxu1 %v1783_v4 }
  0xe7   :  { %v332_v14 = vpop.permute.xlu0 %331 }
 0x1af   :  { %v404_v17 = vpop.f32.mrb[0].mxu0  ;;  %v475_v18 = vpop.f32.mrb[0].mxu1 }
 0x1b0   :  { %v405_v56 = vadd.f32 %v404_v17, %v332_v14  ;;  %v476_v57 = vadd.f32 %v475_v18, %v332_v14  ;;  %v406_v60 = vpop.f32.mrb[1].mxu0  ;;  %v477_v5 = vpop.f32.mrb[1].mxu1 }
 0x1b1   :  { %v407_v9 = vadd.f32 %v406_v60, %v332_v14  ;;  %v478_v15 = vadd.f32 %v477_v5, %v332_v14 }
 0x1b2   :  { %v2153_v6 = vmax.f32 %v405_v56, 0.0  ;;  %v2155_v7 = vmax.f32 %v476_v57, 0.0 }
 0x1b3   :  { %v2161_v13 = vmax.f32 %v407_v9, 0.0  ;;  %v2167_v16 = vmax.f32 %v478_v15, 0.0 }
 0x1b4   :  { %488 = vrot.lane.b32.xlu0 %v2155_v7, %s1776_s24  ;;  %484 = vrot.lane.b32.xlu1 %v2153_v6, %s1776_s24 }
 0x1b8   :  { %500 = vrot.lane.b32.xlu0 %v2153_v6, %s1777_s28  ;;  %486 = vrot.lane.b32.xlu1 %v2161_v13, %s1776_s24 }
 0x1bc   :  { %504 = vrot.lane.b32.xlu0 %v2155_v7, %s1777_s28  ;;  %490 = vrot.lane.b32.xlu1 %v2167_v16, %s1776_s24 }
 0x1c0   :  { %516 = vrot.lane.b32.xlu0 %v2153_v6, %s1778_s29  ;;  %502 = vrot.lane.b32.xlu1 %v2161_v13, %s1777_s28 }
 0x1c4   :  { %520 = vrot.lane.b32.xlu0 %v2155_v7, %s1778_s29  ;;  %506 = vrot.lane.b32.xlu1 %v2167_v16, %s1777_s28 }
 0x1c8   :  { %532 = vrot.lane.b32.xlu0 %v2153_v6, %s1779_s30  ;;  %518 = vrot.lane.b32.xlu1 %v2161_v13, %s1778_s29 }
 0x1cc   :  { %536 = vrot.lane.b32.xlu0 %v2155_v7, %s1779_s30  ;;  %522 = vrot.lane.b32.xlu1 %v2167_v16, %s1778_s29 }
 0x1d0   :  { %548 = vrot.lane.b32.xlu0 %v2153_v6, %s1780_s6  ;;  %534 = vrot.lane.b32.xlu1 %v2161_v13, %s1779_s30 }
 0x1d4   :  { %552 = vrot.lane.b32.xlu0 %v2155_v7, %s1780_s6  ;;  %538 = vrot.lane.b32.xlu1 %v2167_v16, %s1779_s30 }
 0x1d8   :  { %564 = vrot.lane.b32.xlu0 %v2153_v6, %s1781_s7  ;;  %550 = vrot.lane.b32.xlu1 %v2161_v13, %s1780_s6 }
 0x1dc   :  { %568 = vrot.lane.b32.xlu0 %v2155_v7, %s1781_s7  ;;  %554 = vrot.lane.b32.xlu1 %v2167_v16, %s1780_s6 }
 0x1e0   :  { %580 = vrot.lane.b32.xlu0 %v2153_v6, %s1782_s8  ;;  %566 = vrot.lane.b32.xlu1 %v2161_v13, %s1781_s7 }
 0x1e4   :  { %584 = vrot.lane.b32.xlu0 %v2155_v7, %s1782_s8  ;;  %570 = vrot.lane.b32.xlu1 %v2167_v16, %s1781_s7 }
 0x1e8   :  { %596 = vrot.lane.b32.xlu0 %v2153_v6, %s1785_s9  ;;  %582 = vrot.lane.b32.xlu1 %v2161_v13, %s1782_s8 }
 0x1ec   :  { %600 = vrot.lane.b32.xlu0 %v2155_v7, %s1785_s9  ;;  %586 = vrot.lane.b32.xlu1 %v2167_v16, %s1782_s8 }
 0x1f0   :  { %618 = vperm.xlu0 %1692, %v1559_v24   ;;  %598 = vrot.lane.b32.xlu1 %v2161_v13, %s1785_s9 }
 0x1f4   :  { %602 = vrot.lane.b32.xlu1 %v2167_v16, %s1785_s9 }
 0x226   :  { %v489_v25 = vpop.permute.xlu0 %488  ;;  %v485_v37 = vpop.permute.xlu1 %484 }
 0x22a   :  { %v501_v38 = vpop.permute.xlu0 %500  ;;  %v487_v39 = vpop.permute.xlu1 %486 }
 0x22b   :  { %v494_v47 = vsel %vm71_vm0, %v485_v37, %v487_v39  ;;  %v493_v56 = vsel %vm71_vm0, %v487_v39, %v489_v25 }
 0x22c   :  { %v497_v54 = vmul.f32 %v494_v47, %v1945_v19 }
 0x22e   :  { %v505_v8 = vpop.permute.xlu0 %504  ;;  %v491_v42 = vpop.permute.xlu1 %490 }
 0x22f   :  { %v492_v17 = vsel %vm71_vm0, %v489_v25, %v491_v42  ;;  %v495_v18 = vsel %vm71_vm0, %v491_v42, %v485_v37  ;;  %v498_v25 = vmul.f32 %v493_v56, %v1955_v23 }
 0x230   :  { %v496_v47 = vmul.f32 %v495_v18, %v1968_v30 }
 0x232   :  { %v517_v50 = vpop.permute.xlu0 %516  ;;  %v503_v53 = vpop.permute.xlu1 %502 }
 0x233   :  { %v510_v21 = vsel %vm104_vm1, %v501_v38, %v503_v53  ;;  %v509_v55 = vsel %vm104_vm1, %v503_v53, %v505_v8  ;;  %v499_v53 = vmul.f32 %v492_v17, %v1971_v31 }
 0x234   :  { %v513_v14 = vmul.f32 %v510_v21, %v1948_v20  ;;  %v514_v9 = vmul.f32 %v509_v55, %v1961_v27 }
 0x236   :  { %v521_v57 = vpop.permute.xlu0 %520  ;;  %v507_v60 = vpop.permute.xlu1 %506  ;;  %v1607_v5 = vpack.c.bf16 %v513_v14, %v497_v54  ;;  %v1625_v14 = vpack.c.bf16 %v514_v9, %v498_v25 }
 0x237   :  { %v508_v15 = vsel %vm104_vm1, %v505_v8, %v507_v60  ;;  %v511_v24 = vsel %vm104_vm1, %v507_v60, %v501_v38 }
 0x238   :  { %v512_v37 = vmul.f32 %v511_v24, %v1958_v26  ;;  %v515_v42 = vmul.f32 %v508_v15, %v1978_v35  ;;  %1608 = vmatprep.subr.bf16.mxu0 %v1607_v5 }
 0x23a   :  { %v1609_v39 = vpack.c.bf16 %v512_v37, %v496_v47  ;;  %v533_v21 = vpop.permute.xlu0 %532  ;;  %v519_v54 = vpop.permute.xlu1 %518  ;;  %v1623_v55 = vpack.c.bf16 %v515_v42, %v499_v53 }
 0x23b   :  { %v526_v17 = vsel %vm137_vm2, %v517_v50, %v519_v54  ;;  %v525_v53 = vsel %vm137_vm2, %v519_v54, %v521_v57 }
 0x23c   :  { %1610 = vmatpush1.bf16.msra.mxu0 %v1609_v39  ;;  %1624 = vmatprep.subr.bf16.mxu1 %v1623_v55  ;;  %v529_v56 = vmul.f32 %v526_v17, %v1998_v58 }
 0x23d   :  { %1626 = vmatpush1.bf16.msra.mxu1 %v1625_v14 }
 0x23e   :  { %v537_v38 = vpop.permute.xlu0 %536  ;;  %v523_v8 = vpop.permute.xlu1 %522 }
 0x23f   :  { %v524_v24 = vsel %vm137_vm2, %v521_v57, %v523_v8  ;;  %v527_v47 = vsel %vm137_vm2, %v523_v8, %v517_v50  ;;  %v530_v57 = vmul.f32 %v525_v53, %v2010_v62 }
 0x240   :  { %v528_v17 = vmul.f32 %v527_v47, %v2007_v61 }
 0x242   :  { %v549_v18 = vpop.permute.xlu0 %548  ;;  %v535_v60 = vpop.permute.xlu1 %534 }
 0x243   :  { %v542_v5 = vsel %vm170_vm3, %v533_v21, %v535_v60  ;;  %v541_v15 = vsel %vm170_vm3, %v535_v60, %v537_v38  ;;  %v531_v60 = vmul.f32 %v524_v24, %v2013_v63 }
 0x244   :  { %v545_v9 = vmul.f32 %v542_v5, %v2002_v59  ;;  %v546_v39 = vmul.f32 %v541_v15, %v2023_v12 }
 0x246   :  { %v553_v37 = vpop.permute.xlu0 %552  ;;  %v539_v42 = vpop.permute.xlu1 %538  ;;  %v1611_v25 = vpack.c.bf16 %v545_v9, %v529_v56  ;;  %v1629_v9 = vpack.c.bf16 %v546_v39, %v530_v57 }
 0x247   :  { %v540_v55 = vsel %vm170_vm3, %v537_v38, %v539_v42  ;;  %v543_v14 = vsel %vm170_vm3, %v539_v42, %v533_v21 }
 0x248   :  { %v544_v50 = vmul.f32 %v543_v14, %v2020_v10  ;;  %v547_v8 = vmul.f32 %v540_v55, %v2030_v22  ;;  %1612 = vmatprep.subr.bf16.mxu0 %v1611_v25 }
 0x24a   :  { %v1613_v54 = vpack.c.bf16 %v544_v50, %v528_v17  ;;  %v565_v5 = vpop.permute.xlu0 %564  ;;  %v551_v56 = vpop.permute.xlu1 %550  ;;  %v1627_v15 = vpack.c.bf16 %v547_v8, %v531_v60 }
 0x24b   :  { %v557_v38 = vsel %vm203_vm4, %v551_v56, %v553_v37  ;;  %v558_v21 = vsel %vm203_vm4, %v549_v18, %v551_v56 }
 0x24c   :  { %v560_v24 = vmul.f32 %v558_v21, %v2049_v48  ;;  %v561_v47 = vmul.f32 %v557_v38, %v2057_v51  ;;  %1614 = vmatpush1.bf16.msra.mxu0 %v1613_v54  ;;  %1628 = vmatprep.subr.bf16.mxu1 %v1627_v15 }
 0x24d   :  { %1630 = vmatpush1.bf16.msra.mxu1 %v1629_v9 }
 0x24e   :  { %v1617_v53 = vpack.c.bf16 %v560_v24, %v2153_v6  ;;  %v569_v42 = vpop.permute.xlu0 %568  ;;  %v555_v25 = vpop.permute.xlu1 %554  ;;  %v1615_v55 = vpack.c.bf16 %v561_v47, %v2161_v13 }
 0x24f   :  { %v556_v39 = vsel %vm203_vm4, %v553_v37, %v555_v25  ;;  %v559_v14 = vsel %vm203_vm4, %v555_v25, %v549_v18 }
 0x250   :  { %v562_v17 = vmul.f32 %v556_v39, %v2060_v52  ;;  %v563_v60 = vmul.f32 %v559_v14, %v2052_v49  ;;  %1616 = vmatprep.subr.bf16.mxu0 %v1615_v55 }
 0x251   :  { %1618 = vmatpush1.bf16.msra.mxu0 %v1617_v53 }
 0x252   :  { %v1633_v50 = vpack.c.bf16 %v562_v17, %v2155_v7  ;;  %v581_v8 = vpop.permute.xlu0 %580  ;;  %v567_v6 = vpop.permute.xlu1 %566  ;;  %v1631_v57 = vpack.c.bf16 %v563_v60, %v2167_v16 }
 0x253   :  { %v573_v37 = vsel %vm236_vm6, %v567_v6, %v569_v42  ;;  %v574_v18 = vsel %vm236_vm6, %v565_v5, %v567_v6 }
 0x254   :  { %1632 = vmatprep.subr.bf16.mxu1 %v1631_v57  ;;  %v576_v9 = vmul.f32 %v574_v18, %v2108_v46  ;;  %v577_v16 = vmul.f32 %v573_v37, %v2084_v36 }
 0x255   :  { %1634 = vmatpush1.bf16.msra.mxu1 %v1633_v50 }
 0x256   :  { %v585_v13 = vpop.permute.xlu0 %584  ;;  %v571_v54 = vpop.permute.xlu1 %570 }
 0x257   :  { %v572_v47 = vsel %vm236_vm6, %v569_v42, %v571_v54  ;;  %v575_v53 = vsel %vm236_vm6, %v571_v54, %v565_v5 }
 0x258   :  { %v578_v60 = vmul.f32 %v572_v47, %v2089_v40  ;;  %v579_v50 = vmul.f32 %v575_v53, %v2081_v34 }
 0x25a   :  { %v583_v56 = vpop.permute.xlu1 %582  ;;  %v597_v38 = vpop.permute.xlu0 %596 }
 0x25b   :  { %v589_v15 = vsel %vm269_vm5, %v583_v56, %v585_v13  ;;  %v590_v7 = vsel %vm269_vm5, %v581_v8, %v583_v56 }
 0x25c   :  { %v592_v21 = vmul.f32 %v590_v7, %v2094_v41  ;;  %v593_v24 = vmul.f32 %v589_v15, %v2102_v44  ;;  %v613_v15 = vld [vmem:[#allocation5 + $0x8] sm:$0xff] }
 0x25e   :  { %v1621_v25 = vpack.c.bf16 %v592_v21, %v576_v9  ;;  %v587_v55 = vpop.permute.xlu1 %586  ;;  %v1619_v39 = vpack.c.bf16 %v593_v24, %v577_v16  ;;  %v601_v5 = vpop.permute.xlu0 %600 }
 0x25f   :  { %v588_v14 = vsel %vm269_vm5, %v585_v13, %v587_v55  ;;  %v591_v17 = vsel %vm269_vm5, %v587_v55, %v581_v8 }
 0x260   :  { %v594_v6 = vmul.f32 %v588_v14, %v2105_v45  ;;  %v595_v42 = vmul.f32 %v591_v17, %v2099_v43  ;;  %1620 = vmatprep.subr.bf16.mxu0 %v1619_v39 }
 0x261   :  { %1622 = vmatpush1.bf16.msra.mxu0 %v1621_v25 }
 0x262   :  { %v1637_v57 = vpack.c.bf16 %v594_v6, %v578_v60  ;;  %v599_v54 = vpop.permute.xlu1 %598  ;;  %v1635_v37 = vpack.c.bf16 %v595_v42, %v579_v50  ;;  %v770_v60 = vld [vmem:[%s2567_s3] sm:$0xff] }
 0x263   :  { %v605_v13 = vsel %vm302_vm7, %v599_v54, %v601_v5  ;;  %v606_v8 = vsel %vm302_vm7, %v597_v38, %v599_v54 }
 0x264   :  { %v608_v18 = vmul.f32 %v2135_v33, %v606_v8  ;;  %v609_v56 = vmul.f32 %v2131_v29, %v605_v13  ;;  %1636 = vmatprep.subr.bf16.mxu1 %v1635_v37 }
 0x265   :  { %1638 = vmatpush1.bf16.msra.mxu1 %v1637_v57 }
 0x266   :  { %640 = vmatprep.subr.mxu0 %v609_v56  ;;  %v603_v7 = vpop.permute.xlu1 %602 }
 0x267   :  { %v604_v9 = vsel %vm302_vm7, %v601_v5, %v603_v7  ;;  %v607_v16 = vsel %vm302_vm7, %v603_v7, %v597_v38  ;;  %641 = vmatpush1.msra.mxu0 %v608_v18  ;;  %v1562_v38 = vld [vmem:[%s2567_s3 + $0x8] sm:$0xff] }
 0x268   :  { %v610_v21 = vmul.f32 %v2133_v32, %v604_v9  ;;  %v611_v24 = vmul.f32 %v2129_v28, %v607_v16  ;;  %1560 = vmatmul.mubr.msk.f32.vlgmr.msra.gmra.mrb[2].mxu0 %vm334_vm8, %v613_v15  ;;  %777 = vmatprep.subr.mxu0 %v1863_v3 }
 0x269   :  { %778 = vmatpush1.msra.mxu0 %v1849_v1  ;;  %841 = vmatprep.mubr.f32.mxu0 %v1783_v4  ;;  %v1567_v1 = vld [vmem:[%s2568_s4 + $0x18] sm:$0xff] }
 0x26a   :  { %711 = vmatprep.subr.mxu1 %v611_v24  ;;  %1068 = vperm.xlu1 %1693, %v1567_v1   ;;  %v1568_v24 = vld [vmem:[%s2568_s4 + $0x10] sm:$0xff] }
 0x26b   :  { %712 = vmatpush1.msra.mxu1 %v610_v21 }
 0x26c   :  { %1561 = vmatmul.mubr.msk.f32.vlgmr.msra.gmra.mrb[2].mxu1 %vm334_vm8, %v613_v15  ;;  %848 = vmatprep.subr.mxu1 %v1858_v2 }
 0x26d   :  { %849 = vmatpush1.msra.mxu1 %v1844_v0  ;;  %912 = vmatprep.mubr.f32.mxu1 %v1783_v4 }
 0x26e   :  { %1563 = vmatmul.mubr.msk.f32.vlgmr.msra.gmra.mrb[4].mxu0 %vm773_vm9, %v1562_v38 }
 0x26f   :  { %986 = vmatprep.mubr.f32.mxu0 %v1783_v4  ;;  %v619_v0 = vpop.permute.xlu0 %618 }
 0x270   :  { %1564 = vmatmul.mubr.msk.f32.vlgmr.msra.gmra.mrb[4].mxu1 %vm773_vm9, %v1562_v38  ;;  %v1572_v38 = vld [vmem:[%s2568_s4 + $0x20] sm:$0xff] }
 0x271   :  { %1057 = vmatprep.mubr.f32.mxu1 %v1783_v4 }
 0x2e9   :  { %v1069_v5 = vpop.permute.xlu1 %1068 }
 0x33b   :  { %v690_v2 = vpop.f32.mrb[2].mxu0 }
 0x33c   :  { %v691_v3 = vadd.f32 %v690_v2, %v619_v0  ;;  %v692_v47 = vpop.f32.mrb[3].mxu0 }
 0x33d   :  { %v693_v53 = vadd.f32 %v692_v47, %v619_v0 }
 0x33e   :  { %v766_v39 = vmax.f32 %v691_v3, 0.0 }
 0x33f   :  { %v767_v25 = vmax.f32 %v693_v53, 0.0  ;;  %v761_v55 = vpop.f32.mrb[2].mxu1 }
 0x340   :  { %v762_v14 = vadd.f32 %v761_v55, %v619_v0  ;;  %v763_v17 = vpop.f32.mrb[3].mxu1 }
 0x341   :  { %v764_v50 = vadd.f32 %v763_v17, %v619_v0  ;;  %922 = vmatprep.subr.mxu0 %v767_v25 }
 0x342   :  { %923 = vmatpush1.msra.mxu0 %v766_v39  ;;  %v768_v42 = vmax.f32 %v762_v14, 0.0 }
 0x343   :  { %v769_v6 = vmax.f32 %v764_v50, 0.0  ;;  %1565 = vmatmul.mubr.msk.f32.vlgmr.msra.gmra.mrb[4].mxu0 %vm773_vm9, %v770_v60 }
 0x344   :  { %1283 = vmatprep.mubr.f32.mxu0 %v1783_v4 }
 0x345   :  { %993 = vmatprep.subr.mxu1 %v769_v6 }
 0x346   :  { %994 = vmatpush1.msra.mxu1 %v768_v42 }
 0x347   :  { %1566 = vmatmul.mubr.msk.f32.vlgmr.msra.gmra.mrb[4].mxu1 %vm773_vm9, %v770_v60 }
 0x348   :  { %1354 = vmatprep.mubr.f32.mxu1 %v1783_v4 }
 0x416   :  { %v988_v57 = vpop.f32.mrb[4].mxu0 }
 0x417   :  { %v1071_v54 = vadd.f32 %v1069_v5, %v988_v57  ;;  %v990_v37 = vpop.f32.mrb[5].mxu0 }
 0x418   :  { %v1072_v13 = vadd.f32 %v1069_v5, %v990_v37 }
 0x419   :  { %v2353_v8 = vmax.f32 %v1071_v54, 0.0 }
 0x41a   :  { %v2355_v18 = vmax.f32 %v1072_v13, 0.0  ;;  %v1059_v56 = vpop.f32.mrb[4].mxu1 }
 0x41b   :  { %v1073_v15 = vadd.f32 %v1069_v5, %v1059_v56  ;;  %v1061_v7 = vpop.f32.mrb[5].mxu1  ;;  %1079 = vrot.lane.b32.xlu0 %v2353_v8, %s1776_s24 }
 0x41c   :  { %v1074_v9 = vadd.f32 %v1069_v5, %v1061_v7  ;;  %1081 = vrot.lane.b32.xlu1 %v2355_v18, %s1776_s24 }
 0x41d   :  { %v2361_v16 = vmax.f32 %v1073_v15, 0.0 }
 0x41e   :  { %v2363_v21 = vmax.f32 %v1074_v9, 0.0 }
 0x41f   :  { %1083 = vrot.lane.b32.xlu0 %v2361_v16, %s1776_s24 }
 0x420   :  { %1085 = vrot.lane.b32.xlu1 %v2363_v21, %s1776_s24 }
 0x423   :  { %1095 = vrot.lane.b32.xlu0 %v2353_v8, %s1777_s28 }
 0x424   :  { %1097 = vrot.lane.b32.xlu1 %v2355_v18, %s1777_s28 }
 0x427   :  { %1099 = vrot.lane.b32.xlu0 %v2361_v16, %s1777_s28 }
 0x428   :  { %1101 = vrot.lane.b32.xlu1 %v2363_v21, %s1777_s28  ;;  %s1786_s28 = smov [#allocation7]  }
 0x42b   :  { %1111 = vrot.lane.b32.xlu0 %v2353_v8, %s1778_s29 }
 0x42c   :  { %1113 = vrot.lane.b32.xlu1 %v2355_v18, %s1778_s29 }
 0x42f   :  { %1115 = vrot.lane.b32.xlu0 %v2361_v16, %s1778_s29 }
 0x430   :  { %1117 = vrot.lane.b32.xlu1 %v2363_v21, %s1778_s29  ;;  %s1543_s29 = sshll.u32 %s1786_s28, 4  ;;  %s1544_s29 = int_to_ptr.vmem [resolvable:$true] %s1543_s29 }
 0x431   :  { %p1747_p3 = scmp.lt.s32.totalorder %s1544_s29, %s1544_s29 }
 0x433   :  { %1127 = vrot.lane.b32.xlu0 %v2353_v8, %s1779_s30 }
 0x434   :  { %1129 = vrot.lane.b32.xlu1 %v2355_v18, %s1779_s30 }
 0x437   :  { %1131 = vrot.lane.b32.xlu0 %v2361_v16, %s1779_s30 }
 0x438   :  { %1133 = vrot.lane.b32.xlu1 %v2363_v21, %s1779_s30 }
 0x43b   :  { %1143 = vrot.lane.b32.xlu0 %v2353_v8, %s1780_s6 }
 0x43c   :  { %1145 = vrot.lane.b32.xlu1 %v2355_v18, %s1780_s6 }
 0x43f   :  { %1147 = vrot.lane.b32.xlu0 %v2361_v16, %s1780_s6 }
 0x440   :  { %1149 = vrot.lane.b32.xlu1 %v2363_v21, %s1780_s6 }
 0x443   :  { %1159 = vrot.lane.b32.xlu0 %v2353_v8, %s1781_s7 }
 0x444   :  { %1161 = vrot.lane.b32.xlu1 %v2355_v18, %s1781_s7 }
 0x447   :  { %1163 = vrot.lane.b32.xlu0 %v2361_v16, %s1781_s7 }
 0x448   :  { %1165 = vrot.lane.b32.xlu1 %v2363_v21, %s1781_s7  ;;  %s1742_s7 = scalar_lea.vmem %s1544_s29, 256 }
 0x449   :  { %p1743_p2 = scmp.ne.s32.totalorder %s1544_s29, %s1742_s7  ;;  %p1748_p4 = scmp.lt.s32.totalorder %s1742_s7, %s1742_s7 }
 0x44b   :  { %1175 = vrot.lane.b32.xlu0 %v2353_v8, %s1782_s8  ;;  %p1749_p5 = por %p1748_p4, %p1747_p3 }
 0x44c   :  { %1177 = vrot.lane.b32.xlu1 %v2355_v18, %s1782_s8 }
 0x44d   :  { %p1750_p6 = pnand %p1749_p5, %p1743_p2 }
 0x44f   :  { %1179 = vrot.lane.b32.xlu0 %v2361_v16, %s1782_s8 }
 0x450   :  { %1181 = vrot.lane.b32.xlu1 %v2363_v21, %s1782_s8 }
 0x453   :  { %1191 = vrot.lane.b32.xlu0 %v2353_v8, %s1785_s9 }
 0x454   :  { %1193 = vrot.lane.b32.xlu1 %v2355_v18, %s1785_s9 }
 0x457   :  { %1195 = vrot.lane.b32.xlu0 %v2361_v16, %s1785_s9 }
 0x458   :  { %1197 = vrot.lane.b32.xlu1 %v2363_v21, %s1785_s9 }
 0x45b   :  { %1213 = vperm.xlu0 %1692, %v1568_v24  }
 0x45c   :  { %1371 = vperm.xlu1 %1693, %v1572_v38  }
 0x48d   :  { %v1080_v1 = vpop.permute.xlu0 %1079 }
 0x48e   :  { %v1082_v0 = vpop.permute.xlu1 %1081 }
 0x48f   :  { %v1089_v47 = vsel %vm71_vm0, %v1080_v1, %v1082_v0 }
 0x490   :  { %v1092_v39 = vmul.f32 %v1089_v47, %v1945_v19 }
 0x491   :  { %v1084_v2 = vpop.permute.xlu0 %1083 }
 0x492   :  { %v1086_v3 = vpop.permute.xlu1 %1085  ;;  %v1088_v6 = vsel %vm71_vm0, %v1082_v0, %v1084_v2 }
 0x493   :  { %v1087_v17 = vsel %vm71_vm0, %v1084_v2, %v1086_v3  ;;  %v1090_v60 = vsel %vm71_vm0, %v1086_v3, %v1080_v1  ;;  %v1093_v7 = vmul.f32 %v1088_v6, %v1955_v23 }
 0x494   :  { %v1091_v37 = vmul.f32 %v1090_v60, %v1968_v30  ;;  %v1094_v13 = vmul.f32 %v1087_v17, %v1971_v31 }
 0x495   :  { %v1096_v53 = vpop.permute.xlu0 %1095 }
 0x496   :  { %v1098_v25 = vpop.permute.xlu1 %1097 }
 0x497   :  { %v1105_v55 = vsel %vm104_vm1, %v1096_v53, %v1098_v25 }
 0x498   :  { %v1108_v14 = vmul.f32 %v1105_v55, %v1948_v20 }
 0x499   :  { %v1100_v50 = vpop.permute.xlu0 %1099 }
 0x49a   :  { %v1104_v42 = vsel %vm104_vm1, %v1098_v25, %v1100_v50  ;;  %v1102_v5 = vpop.permute.xlu1 %1101  ;;  %v1639_v57 = vpack.c.bf16 %v1108_v14, %v1092_v39 }
 0x49b   :  { %v1109_v54 = vmul.f32 %v1104_v42, %v1961_v27  ;;  %v1103_v19 = vsel %vm104_vm1, %v1100_v50, %v1102_v5  ;;  %v1106_v20 = vsel %vm104_vm1, %v1102_v5, %v1096_v53 }
 0x49c   :  { %v1107_v56 = vmul.f32 %v1106_v20, %v1958_v26  ;;  %v1110_v15 = vmul.f32 %v1103_v19, %v1978_v35  ;;  %1640 = vmatprep.subr.bf16.mxu0 %v1639_v57 }
 0x49d   :  { %v1112_v9 = vpop.permute.xlu0 %1111  ;;  %v1657_v1 = vpack.c.bf16 %v1109_v54, %v1093_v7 }
 0x49e   :  { %v1641_v24 = vpack.c.bf16 %v1107_v56, %v1091_v37  ;;  %v1114_v27 = vpop.permute.xlu1 %1113  ;;  %v1655_v38 = vpack.c.bf16 %v1110_v15, %v1094_v13 }
 0x49f   :  { %v1121_v30 = vsel %vm137_vm2, %v1112_v9, %v1114_v27 }
 0x4a0   :  { %1642 = vmatpush1.bf16.msra.mxu0 %v1641_v24  ;;  %1656 = vmatprep.subr.bf16.mxu1 %v1655_v38  ;;  %v1124_v23 = vmul.f32 %v1121_v30, %v1998_v58 }
 0x4a1   :  { %1658 = vmatpush1.bf16.msra.mxu1 %v1657_v1  ;;  %v1116_v0 = vpop.permute.xlu0 %1115 }
 0x4a2   :  { %v1118_v2 = vpop.permute.xlu1 %1117  ;;  %v1120_v55 = vsel %vm137_vm2, %v1114_v27, %v1116_v0 }
 0x4a3   :  { %v1119_v47 = vsel %vm137_vm2, %v1116_v0, %v1118_v2  ;;  %v1122_v53 = vsel %vm137_vm2, %v1118_v2, %v1112_v9  ;;  %v1125_v57 = vmul.f32 %v1120_v55, %v2010_v62 }
 0x4a4   :  { %v1123_v50 = vmul.f32 %v1122_v53, %v2007_v61  ;;  %v1126_v6 = vmul.f32 %v1119_v47, %v2013_v63 }
 0x4a5   :  { %v1128_v31 = vpop.permute.xlu0 %1127 }
 0x4a6   :  { %v1130_v26 = vpop.permute.xlu1 %1129 }
 0x4a7   :  { %v1137_v35 = vsel %vm170_vm3, %v1128_v31, %v1130_v26 }
 0x4a8   :  { %v1140_v3 = vmul.f32 %v1137_v35, %v2002_v59 }
 0x4a9   :  { %v1132_v25 = vpop.permute.xlu0 %1131 }
 0x4aa   :  { %v1136_v39 = vsel %vm170_vm3, %v1130_v26, %v1132_v25  ;;  %v1134_v14 = vpop.permute.xlu1 %1133  ;;  %v1643_v17 = vpack.c.bf16 %v1140_v3, %v1124_v23 }
 0x4ab   :  { %v1141_v60 = vmul.f32 %v1136_v39, %v2023_v12  ;;  %v1135_v58 = vsel %vm170_vm3, %v1132_v25, %v1134_v14  ;;  %v1138_v59 = vsel %vm170_vm3, %v1134_v14, %v1128_v31 }
 0x4ac   :  { %v1139_v42 = vmul.f32 %v1138_v59, %v2020_v10  ;;  %v1142_v5 = vmul.f32 %v1135_v58, %v2030_v22  ;;  %1644 = vmatprep.subr.bf16.mxu0 %v1643_v17 }
 0x4ad   :  { %v1144_v54 = vpop.permute.xlu0 %1143  ;;  %v1661_v37 = vpack.c.bf16 %v1141_v60, %v1125_v57 }
 0x4ae   :  { %v1645_v19 = vpack.c.bf16 %v1139_v42, %v1123_v50  ;;  %v1146_v12 = vpop.permute.xlu1 %1145  ;;  %v1659_v20 = vpack.c.bf16 %v1142_v5, %v1126_v6 }
 0x4af   :  { %v1153_v13 = vsel %vm203_vm4, %v1144_v54, %v1146_v12 }
 0x4b0   :  { %1646 = vmatpush1.bf16.msra.mxu0 %v1645_v19  ;;  %1660 = vmatprep.subr.bf16.mxu1 %v1659_v20  ;;  %v1155_v63 = vmul.f32 %v1153_v13, %v2049_v48  ;;  %v1208_v19 = vld [vmem:[#allocation5 + $0x10] sm:$0xff] }
 0x4b1   :  { %1662 = vmatpush1.bf16.msra.mxu1 %v1661_v37  ;;  %v1148_v61 = vpop.permute.xlu0 %1147 }
 0x4b2   :  { %v1152_v10 = vsel %vm203_vm4, %v1146_v12, %v1148_v61  ;;  %v1150_v22 = vpop.permute.xlu1 %1149  ;;  %v1649_v48 = vpack.c.bf16 %v1155_v63, %v2353_v8 }
 0x4b3   :  { %v1156_v62 = vmul.f32 %v1152_v10, %v2057_v51  ;;  %v1151_v56 = vsel %vm203_vm4, %v1148_v61, %v1150_v22  ;;  %v1154_v15 = vsel %vm203_vm4, %v1150_v22, %v1144_v54  ;;  %v1571_v22 = vld [vmem:[%s2567_s3 + $0x10] sm:$0xff] }
 0x4b4   :  { %v1157_v7 = vmul.f32 %v1151_v56, %v2060_v52  ;;  %v1158_v9 = vmul.f32 %v1154_v15, %v2052_v49 }
 0x4b5   :  { %v1160_v24 = vpop.permute.xlu0 %1159  ;;  %v1647_v27 = vpack.c.bf16 %v1156_v62, %v2355_v18 }
 0x4b6   :  { %v1665_v38 = vpack.c.bf16 %v1157_v7, %v2361_v16  ;;  %v1162_v1 = vpop.permute.xlu1 %1161  ;;  %v1663_v51 = vpack.c.bf16 %v1158_v9, %v2363_v21 }
 0x4b7   :  { %1648 = vmatprep.subr.bf16.mxu0 %v1647_v27  ;;  %v1169_v49 = vsel %vm236_vm6, %v1160_v24, %v1162_v1 }
 0x4b8   :  { %1650 = vmatpush1.bf16.msra.mxu0 %v1649_v48  ;;  %1664 = vmatprep.subr.bf16.mxu1 %v1663_v51  ;;  %v1171_v26 = vmul.f32 %v1169_v49, %v2108_v46  ;;  %v1695_v49 = vld [vmem:[%s2564_s0 + $0x8] sm:$0xff] }
 0x4b9   :  { %1666 = vmatpush1.bf16.msra.mxu1 %v1665_v38  ;;  %v1164_v0 = vpop.permute.xlu0 %1163 }
 0x4ba   :  { %v1166_v2 = vpop.permute.xlu1 %1165  ;;  %v1168_v8 = vsel %vm236_vm6, %v1162_v1, %v1164_v0 }
 0x4bb   :  { %v1167_v16 = vsel %vm236_vm6, %v1164_v0, %v1166_v2  ;;  %v1170_v21 = vsel %vm236_vm6, %v1166_v2, %v1160_v24  ;;  %v1172_v47 = vmul.f32 %v1168_v8, %v2084_v36  ;;  %v1694_v2 = vld [vmem:[%s2564_s0] sm:$0xff]  ;;  %v1696_v8 = vld [vmem:[%s2564_s0 + $0x10] sm:$0xff] }
 0x4bc   :  { %v1173_v39 = vmul.f32 %v1167_v16, %v2089_v40  ;;  %v1174_v46 = vmul.f32 %v1170_v21, %v2081_v34  ;;  %v1697_v21 = vld [vmem:[%s2564_s0 + $0x18] sm:$0xff] }
 0x4bd   :  { %v1176_v30 = vpop.permute.xlu0 %1175 }
 0x4be   :  { %v1178_v52 = vpop.permute.xlu1 %1177 }
 0x4bf   :  { %v1185_v18 = vsel %vm269_vm5, %v1176_v30, %v1178_v52 }
 0x4c0   :  { %v1187_v35 = vmul.f32 %v1185_v18, %v2094_v41 }
 0x4c1   :  { %v1180_v31 = vpop.permute.xlu0 %1179 }
 0x4c2   :  { %v1184_v23 = vsel %vm269_vm5, %v1178_v52, %v1180_v31  ;;  %v1182_v3 = vpop.permute.xlu1 %1181  ;;  %v1653_v58 = vpack.c.bf16 %v1187_v35, %v1171_v26 }
 0x4c3   :  { %v1188_v53 = vmul.f32 %v1184_v23, %v2102_v44  ;;  %v1183_v25 = vsel %vm269_vm5, %v1180_v31, %v1182_v3  ;;  %v1186_v55 = vsel %vm269_vm5, %v1182_v3, %v1176_v30 }
 0x4c4   :  { %v1189_v41 = vmul.f32 %v1183_v25, %v2105_v45  ;;  %v1190_v14 = vmul.f32 %v1186_v55, %v2099_v43 }
 0x4c5   :  { %v1192_v17 = vpop.permute.xlu0 %1191  ;;  %v1651_v60 = vpack.c.bf16 %v1188_v53, %v1172_v47 }
 0x4c6   :  { %v1669_v36 = vpack.c.bf16 %v1189_v41, %v1173_v39  ;;  %v1194_v59 = vpop.permute.xlu1 %1193  ;;  %v1667_v44 = vpack.c.bf16 %v1190_v14, %v1174_v46 }
 0x4c7   :  { %1652 = vmatprep.subr.bf16.mxu0 %v1651_v60  ;;  %v1201_v50 = vsel %vm302_vm7, %v1192_v17, %v1194_v59 }
 0x4c8   :  { %1654 = vmatpush1.bf16.msra.mxu0 %v1653_v58  ;;  %1668 = vmatprep.subr.bf16.mxu1 %v1667_v44  ;;  %v1203_v5 = vmul.f32 %v2135_v33, %v1201_v50 }
 0x4c9   :  { %1670 = vmatpush1.bf16.msra.mxu1 %v1669_v36  ;;  %v1196_v40 = vpop.permute.xlu0 %1195 }
 0x4ca   :  { %v1200_v34 = vsel %vm302_vm7, %v1194_v59, %v1196_v40  ;;  %v1198_v45 = vpop.permute.xlu1 %1197 }
 0x4cb   :  { %v1204_v43 = vmul.f32 %v2131_v29, %v1200_v34  ;;  %v1199_v6 = vsel %vm302_vm7, %v1196_v40, %v1198_v45  ;;  %v1202_v42 = vsel %vm302_vm7, %v1198_v45, %v1192_v17 }
 0x4cc   :  { %v1205_v57 = vmul.f32 %v2133_v32, %v1199_v6  ;;  %v1206_v54 = vmul.f32 %v2129_v28, %v1202_v42 }
 0x4cd   :  { %1235 = vmatprep.subr.mxu0 %v1204_v43 }
 0x4ce   :  { %1236 = vmatpush1.msra.mxu0 %v1203_v5  ;;  %1306 = vmatprep.subr.mxu1 %v1206_v54 }
 0x4cf   :  { %1569 = vmatmul.mubr.msk.f32.vlgmr.msra.gmra.mrb[6].mxu0 %vm334_vm8, %v1208_v19  ;;  %1307 = vmatpush1.msra.mxu1 %v1205_v57 }
 0x4d0   :  { %1570 = vmatmul.mubr.msk.f32.vlgmr.msra.gmra.mrb[6].mxu1 %vm334_vm8, %v1208_v19  ;;  %1441 = vmatprep.mubr.f32.mxu0 %v1783_v4 }
 0x4d1   :  { %1512 = vmatprep.mubr.f32.mxu1 %v1783_v4 }
 0x4da   :  { %v1214_v11 = vpop.permute.xlu0 %1213 }
 0x4db   :  { %v1372_v4 = vpop.permute.xlu1 %1371 }
 0x5a2   :  { %v1285_v29 = vpop.f32.mrb[6].mxu0 }
 0x5a3   :  { %v1286_v33 = vadd.f32 %v1285_v29, %v1214_v11  ;;  %v1287_v12 = vpop.f32.mrb[7].mxu0  ;;  %v1356_v32 = vpop.f32.mrb[6].mxu1 }
 0x5a4   :  { %v1288_v20 = vadd.f32 %v1287_v12, %v1214_v11  ;;  %v1357_v28 = vadd.f32 %v1356_v32, %v1214_v11  ;;  %v1358_v37 = vpop.f32.mrb[7].mxu1 }
 0x5a5   :  { %v1359_v13 = vadd.f32 %v1358_v37, %v1214_v11  ;;  %v1361_v63 = vmax.f32 %v1286_v33, 0.0 }
 0x5a6   :  { %v1362_v61 = vmax.f32 %v1288_v20, 0.0  ;;  %v1363_v62 = vmax.f32 %v1357_v28, 0.0 }
 0x5a7   :  { %v1364_v10 = vmax.f32 %v1359_v13, 0.0 }
 0x5a8   :  { %1377 = vmatprep.subr.mxu0 %v1362_v61 }
 0x5a9   :  { %1378 = vmatpush1.msra.mxu0 %v1361_v63  ;;  %1448 = vmatprep.subr.mxu1 %v1364_v10 }
 0x5aa   :  { %1573 = vmatmul.mubr.msk.f32.vlgmr.msra.gmra.mrb[8].mxu0 %vm773_vm9, %v1571_v22  ;;  %1449 = vmatpush1.msra.mxu1 %v1363_v62 }
 0x5ab   :  { %1574 = vmatmul.mubr.msk.f32.vlgmr.msra.gmra.mrb[8].mxu1 %vm773_vm9, %v1571_v22 }
 0x67d   :  { %v1443_v56 = vpop.f32.mrb[8].mxu0 }
 0x67e   :  { %v1444_v15 = vadd.f32 %v1443_v56, %v1372_v4  ;;  %v1445_v7 = vpop.f32.mrb[9].mxu0  ;;  %v1514_v9 = vpop.f32.mrb[8].mxu1 }
 0x67f   :  { %v1446_v24 = vadd.f32 %v1445_v7, %v1372_v4  ;;  %v1515_v27 = vadd.f32 %v1514_v9, %v1372_v4  ;;  %v1516_v48 = vpop.f32.mrb[9].mxu1 }
 0x680   :  { %v1519_v38 = vmax.f32 %v1444_v15, 0.0  ;;  %v1517_v1 = vadd.f32 %v1516_v48, %v1372_v4 }
 0x681   :  { %v1520_v51 = vmax.f32 %v1446_v24, 0.0  ;;  %v1521_v0 = vmax.f32 %v1515_v27, 0.0 }
 0x682   :  { %v1523_v30 = vadd.f32 %v1694_v2, %v1519_v38  ;;  %v1522_v52 = vmax.f32 %v1517_v1, 0.0 }
 0x683   :  { %v1524_v18 = vadd.f32 %v1695_v49, %v1520_v51  ;;  %v1525_v16 = vadd.f32 %v1696_v8, %v1521_v0 }
 0x684   :  { %v1526_v31 = vadd.f32 %v1697_v21, %v1522_v52 }
 0x685   :  { %v1531_v26 = vcombine.low %v1523_v30, %v1524_v18 }
 0x686   :  { %v1532_v35 = vcombine.low %v1525_v16, %v1526_v31 }
 0x687   :  { %1535 = vst [vmem:[#allocation7] sm:$0xff] %v1531_v26 }
 0x688   :  { %1536 = vst [vmem:[#allocation7 + $0x8] sm:$0xff] %v1532_v35 }
 0x689   :  { %1753 = shalt.err (!%p1750_p6)
}
 0x68a   :  { %s1754_s10 = scalar_lea.hbm %s2569_s5, 256 }
 0x68b   :  { %p1755_p7 = scmp.ne.s32.totalorder %s2569_s5, %s1754_s10  ;;  %p1758_p8 = scmp.lt.u32.totalorder %s1754_s10, %s2569_s5 }
 0x68d   :  { %p1760_p9 = pnand %p1758_p8, %p1755_p7 }
 0x68f   :  { %1763 = shalt.err (!%p1760_p9)
}
 0x690   :  { %1546 = dma.vmem_to_hbm [thread:$0]  %s1544_s29, 256, %s2569_s5, [#allocation4]  }
 0x691   :  { %1768 = dma.done.wait [#allocation4], 256  }
 0x692   :  { %1769 = vsyncadd [#allocation4], 4294967040 }
 0x693   :  { %1550 = vsyncpa [#allocation3], 1 }
 0x694   :  { %1551 = vsyncpa [#allocation6], 1 }
 0x695   :  { %1552 = vsyncpa [#allocation4], 1 }

</bundles_post_ra>
